<compile_context>
chip_gen: v6e
topology: v6e:2x2x1
jax: 0.10.0
libtpu: 0.0.40
codegen_flags: <defaults>
</compile_context>

<pallas_src>
import functools

import jax
import jax.numpy as jnp
import numpy as np
from jax.experimental import pallas as pl
from jax.experimental.pallas import tpu as pltpu


def capsule_kernel(x_ref, w_ref, out_ref, *, routings):
    # x_ref : (Bt, I, K)    batch block, capsule axis K on the 128-wide lanes
    # w_ref : (I, J, D, K)  full routing weight (VMEM-resident across grid steps)
    # out_ref: (Bt, J, D)
    Bt, I, K = x_ref.shape
    _, J, D, _ = w_ref.shape

    def one_sample(bi):
        x = x_ref[bi].astype(jnp.float32)                  # (I, K)

        # x_hat[j,d,k] = sum_i W[i,j,d,k] * x[i,k]
        # Stream W per-I slice: live set = x_hat (J,D,K) + one (J,D,K) slice.
        x_hat = jnp.zeros((J, D, K), jnp.float32)
        for i in range(I):                                 # I small -> static unroll
            w_i = w_ref[i].astype(jnp.float32)             # (J, D, K), dense leading-axis load
            x_i = x[i:i + 1, :]                            # (1, K)
            x_hat = x_hat + w_i * x_i[None, :, :]          # broadcast row over (J, D)

        # ---------------- dynamic routing ----------------
        b = jnp.zeros((J, K), jnp.float32)
        v = jnp.zeros((J, D), jnp.float32)
        for it in range(routings):
            if it == 0:
                # b == 0  =>  softmax over J is exactly uniform; skip the exps.
                c = jnp.full((J, K), 1.0 / J, jnp.float32)
            else:
                # softmax over the out-capsule axis J (torch: F.softmax(b, dim=1))
                bmax = jnp.max(b, axis=0, keepdims=True)   # (1, K)
                e = jnp.exp(b - bmax)                      # EUP
                c = e / jnp.sum(e, axis=0, keepdims=True)  # (J, K)

            # s[j,d] = sum_k c[j,k] * x_hat[j,d,k]   (lane reduction -> XLU)
            s = jnp.sum(c[:, None, :] * x_hat, axis=-1)    # (J, D)

            # squash over the out_dim axis (torch squash, eps = 1e-8)
            nrm2 = jnp.sum(s * s, axis=-1, keepdims=True)  # (J, 1)
            nrm = jnp.sqrt(nrm2)
            v = (nrm2 / (1.0 + nrm2) / (nrm + 1e-8)) * s   # (J, D)

            if it != routings - 1:
                # b[j,k] += sum_d v[j,d] * x_hat[j,d,k]   (sublane reduction)
                b = b + jnp.sum(v[:, :, None] * x_hat, axis=1)

        out_ref[bi] = v

    if Bt == 1:
        one_sample(0)              # static index: best addressing / scheduling
    else:
        # scf.for bounds the per-sample live range (no vreg-pressure blowup when
        # the batch block is raised to amortize the ~0.35us/step grid overhead).
        pl.loop(0, Bt)(one_sample)


def prepare_weight(weight, dtype=jnp.float32):
    """One-time parameter prep (do this at init, NOT per forward call).

    torch layout (J=out_caps, K=in_caps, D=out_dim, I=in_dim) ->
    kernel layout (I, J, D, K): capsule axis K on lanes, I leading so per-slice
    streaming is a dense leading-axis load.  dtype=jnp.bfloat16 halves W
    HBM/VMEM traffic; the kernel upcasts each slice to f32 before the math.
    """
    return jnp.transpose(weight, (3, 0, 2, 1)).astype(dtype)


def _pick_batch_block(batch):
    # Batch elements per grid step: amortize the fixed per-step overhead while
    # keeping >= 2 "parallel" grid steps when possible (megacore sharding),
    # capped at 8; the block must divide the batch.
    cap = max(1, min(8, batch // 2))
    for bt in range(cap, 0, -1):
        if batch % bt == 0:
            return bt
    return 1


@functools.partial(jax.jit, static_argnames=("routings", "batch_block"))
def capsule_net_forward(x, w_t, routings=3, batch_block=None):
    """x: [B, in_num_caps K, in_dim_caps I] ; w_t: [I, J, D, K] pre-transposed."""
    B, K, I = x.shape
    I2, J, D, K2 = w_t.shape
    assert K == K2 and I == I2

    bt = batch_block if batch_block is not None else _pick_batch_block(B)
    assert B % bt == 0

    # small glue transpose: put the capsule axis K on the 128-wide lane dim
    x_t = jnp.transpose(x, (0, 2, 1)).astype(jnp.float32)   # (B, I, K)

    kernel = functools.partial(capsule_kernel, routings=routings)
    out = pl.pallas_call(
        kernel,
        out_shape=jax.ShapeDtypeStruct((B, J, D), jnp.float32),
        grid_spec=pltpu.PrefetchScalarGridSpec(
            num_scalar_prefetch=0,
            grid=(B // bt,),
            in_specs=[
                pl.BlockSpec((bt, I, K), lambda g: (g, 0, 0)),
                # constant index_map -> W stays resident in VMEM, DMA'd once
                pl.BlockSpec((I, J, D, K), lambda g: (0, 0, 0, 0)),
            ],
            out_specs=pl.BlockSpec((bt, J, D), lambda g: (g, 0, 0)),
        ),
        compiler_params=pltpu.CompilerParams(
            dimension_semantics=("parallel",)),
    )(x_t, w_t)
    return out


def _reference_forward(x, weight, routings=3):
    # pure-JAX reference mirroring the torch code (weight in torch layout J,K,D,I)
    x_hat = jnp.einsum('jkdi,bki->bjkd', weight.astype(jnp.float32), x)   # (B,J,K,D)
    B, J, K, D = x_hat.shape
    b = jnp.zeros((B, J, K), jnp.float32)
    outputs = None
    for i in range(routings):
        c = jax.nn.softmax(b, axis=1)
        s = jnp.sum(c[..., None] * x_hat, axis=-2, keepdims=True)  # (B,J,1,D)
        norm = jnp.linalg.norm(s, axis=-1, keepdims=True)
        scale = norm ** 2 / (1 + norm ** 2) / (norm + 1e-8)
        outputs = scale * s
        if i != routings - 1:
            b = b + jnp.sum(outputs * x_hat, axis=-1)
    return jnp.squeeze(outputs, axis=-2)


if __name__ == "__main__":
    # small, module-consistent sizes
    in_num_caps = 128      # K (multiple of 128 -> lane axis)
    in_dim_caps = 8        # I
    classes = 10           # J (out_num_caps)
    out_dim_caps = 16      # D
    routings = 3

    key = jax.random.PRNGKey(0)
    kx, kw, kx2 = jax.random.split(key, 3)
    weight = 0.01 * jax.random.normal(
        kw, (classes, in_num_caps, out_dim_caps, in_dim_caps), dtype=jnp.float32)

    # ---- f32 path, batch block == 1 (B=2) ----
    x = jax.random.normal(kx, (2, in_num_caps, in_dim_caps), dtype=jnp.float32)
    w_t = prepare_weight(weight, dtype=jnp.float32)      # one-time prep
    out = jax.block_until_ready(capsule_net_forward(x, w_t, routings=routings))
    ref = _reference_forward(x, weight, routings=routings)
    np.testing.assert_allclose(np.asarray(out), np.asarray(ref),
                               rtol=1e-5, atol=1e-6)

    # ---- f32 path, batch block > 1 (exercises the in-kernel pl.loop path) ----
    x8 = jax.random.normal(kx2, (8, in_num_caps, in_dim_caps), dtype=jnp.float32)
    out8 = jax.block_until_ready(capsule_net_forward(x8, w_t, routings=routings))
    ref8 = _reference_forward(x8, weight, routings=routings)
    np.testing.assert_allclose(np.asarray(out8), np.asarray(ref8),
                               rtol=1e-5, atol=1e-6)

    # ---- optional bf16-compressed-weight path (halves W DMA traffic) ----
    w_t_bf16 = prepare_weight(weight, dtype=jnp.bfloat16)
    out_bf16 = jax.block_until_ready(
        capsule_net_forward(x, w_t_bf16, routings=routings))
    weight_q = weight.astype(jnp.bfloat16).astype(jnp.float32)  # same rounding
    ref_bf16 = _reference_forward(x, weight_q, routings=routings)
    np.testing.assert_allclose(np.asarray(out_bf16), np.asarray(ref_bf16),
                               rtol=1e-4, atol=1e-5)

    print("KERNEL_OK")
</pallas_src>

<mosaic_0001>
module attributes {stable_mosaic.version = 11 : i64} {
  func.func @capsule_kernel(%arg0: i32, %arg1: memref<1x8x128xf32, #tpu.memory_space<vmem>>, %arg2: memref<8x10x16x128xf32, #tpu.memory_space<vmem>>, %arg3: memref<1x10x16xf32, #tpu.memory_space<vmem>>) attributes {dimension_semantics = [#tpu.dimension_semantics<parallel>], iteration_bounds = array<i64: 2>, scalar_prefetch = 0 : i64, scratch_operands = 0 : i64, tpu.core_type = #tpu.core_type<tc>, window_params = [{transform_indices = @transform_0, window_bounds = array<i64: 1, 8, 128>}, {pipeline_mode = #tpu.pipeline_mode<synchronous>, transform_indices = @transform_1, window_bounds = array<i64: 8, 10, 16, 128>}, {transform_indices = @transform_2, window_bounds = array<i64: 1, 10, 16>}]} {
    %c0 = arith.constant 0 : index
    %c0_0 = arith.constant 0 : index
    %c0_1 = arith.constant 0 : index
    %0 = vector.load %arg1[%c0, %c0_0, %c0_1] : memref<1x8x128xf32, #tpu.memory_space<vmem>>, vector<1x8x128xf32>
    %1 = vector.shape_cast %0 : vector<1x8x128xf32> to vector<8x128xf32>
    %cst = arith.constant 0.000000e+00 : f32
    %2 = vector.broadcast %cst : f32 to vector<10x16x128xf32>
    %c0_2 = arith.constant 0 : index
    %c0_3 = arith.constant 0 : index
    %c0_4 = arith.constant 0 : index
    %c0_5 = arith.constant 0 : index
    %3 = vector.load %arg2[%c0_2, %c0_3, %c0_4, %c0_5] : memref<8x10x16x128xf32, #tpu.memory_space<vmem>>, vector<1x10x16x128xf32>
    %4 = vector.shape_cast %3 : vector<1x10x16x128xf32> to vector<10x16x128xf32>
    %5 = vector.extract_strided_slice %1 {offsets = [0, 0], sizes = [1, 128], strides = [1, 1]} : vector<8x128xf32> to vector<1x128xf32>
    %6 = vector.shape_cast %5 : vector<1x128xf32> to vector<1x1x128xf32>
    %7 = vector.broadcast %6 : vector<1x1x128xf32> to vector<10x16x128xf32>
    %8 = arith.mulf %4, %7 : vector<10x16x128xf32>
    %9 = arith.addf %2, %8 : vector<10x16x128xf32>
    %c1 = arith.constant 1 : index
    %c0_6 = arith.constant 0 : index
    %c0_7 = arith.constant 0 : index
    %c0_8 = arith.constant 0 : index
    %10 = vector.load %arg2[%c1, %c0_6, %c0_7, %c0_8] : memref<8x10x16x128xf32, #tpu.memory_space<vmem>>, vector<1x10x16x128xf32>
    %11 = vector.shape_cast %10 : vector<1x10x16x128xf32> to vector<10x16x128xf32>
    %12 = vector.extract_strided_slice %1 {offsets = [1, 0], sizes = [1, 128], strides = [1, 1]} : vector<8x128xf32> to vector<1x128xf32>
    %13 = vector.shape_cast %12 : vector<1x128xf32> to vector<1x1x128xf32>
    %14 = vector.broadcast %13 : vector<1x1x128xf32> to vector<10x16x128xf32>
    %15 = arith.mulf %11, %14 : vector<10x16x128xf32>
    %16 = arith.addf %9, %15 : vector<10x16x128xf32>
    %c2 = arith.constant 2 : index
    %c0_9 = arith.constant 0 : index
    %c0_10 = arith.constant 0 : index
    %c0_11 = arith.constant 0 : index
    %17 = vector.load %arg2[%c2, %c0_9, %c0_10, %c0_11] : memref<8x10x16x128xf32, #tpu.memory_space<vmem>>, vector<1x10x16x128xf32>
    %18 = vector.shape_cast %17 : vector<1x10x16x128xf32> to vector<10x16x128xf32>
    %19 = vector.extract_strided_slice %1 {offsets = [2, 0], sizes = [1, 128], strides = [1, 1]} : vector<8x128xf32> to vector<1x128xf32>
    %20 = vector.shape_cast %19 : vector<1x128xf32> to vector<1x1x128xf32>
    %21 = vector.broadcast %20 : vector<1x1x128xf32> to vector<10x16x128xf32>
    %22 = arith.mulf %18, %21 : vector<10x16x128xf32>
    %23 = arith.addf %16, %22 : vector<10x16x128xf32>
    %c3 = arith.constant 3 : index
    %c0_12 = arith.constant 0 : index
    %c0_13 = arith.constant 0 : index
    %c0_14 = arith.constant 0 : index
    %24 = vector.load %arg2[%c3, %c0_12, %c0_13, %c0_14] : memref<8x10x16x128xf32, #tpu.memory_space<vmem>>, vector<1x10x16x128xf32>
    %25 = vector.shape_cast %24 : vector<1x10x16x128xf32> to vector<10x16x128xf32>
    %26 = vector.extract_strided_slice %1 {offsets = [3, 0], sizes = [1, 128], strides = [1, 1]} : vector<8x128xf32> to vector<1x128xf32>
    %27 = vector.shape_cast %26 : vector<1x128xf32> to vector<1x1x128xf32>
    %28 = vector.broadcast %27 : vector<1x1x128xf32> to vector<10x16x128xf32>
    %29 = arith.mulf %25, %28 : vector<10x16x128xf32>
    %30 = arith.addf %23, %29 : vector<10x16x128xf32>
    %c4 = arith.constant 4 : index
    %c0_15 = arith.constant 0 : index
    %c0_16 = arith.constant 0 : index
    %c0_17 = arith.constant 0 : index
    %31 = vector.load %arg2[%c4, %c0_15, %c0_16, %c0_17] : memref<8x10x16x128xf32, #tpu.memory_space<vmem>>, vector<1x10x16x128xf32>
    %32 = vector.shape_cast %31 : vector<1x10x16x128xf32> to vector<10x16x128xf32>
    %33 = vector.extract_strided_slice %1 {offsets = [4, 0], sizes = [1, 128], strides = [1, 1]} : vector<8x128xf32> to vector<1x128xf32>
    %34 = vector.shape_cast %33 : vector<1x128xf32> to vector<1x1x128xf32>
    %35 = vector.broadcast %34 : vector<1x1x128xf32> to vector<10x16x128xf32>
    %36 = arith.mulf %32, %35 : vector<10x16x128xf32>
    %37 = arith.addf %30, %36 : vector<10x16x128xf32>
    %c5 = arith.constant 5 : index
    %c0_18 = arith.constant 0 : index
    %c0_19 = arith.constant 0 : index
    %c0_20 = arith.constant 0 : index
    %38 = vector.load %arg2[%c5, %c0_18, %c0_19, %c0_20] : memref<8x10x16x128xf32, #tpu.memory_space<vmem>>, vector<1x10x16x128xf32>
    %39 = vector.shape_cast %38 : vector<1x10x16x128xf32> to vector<10x16x128xf32>
    %40 = vector.extract_strided_slice %1 {offsets = [5, 0], sizes = [1, 128], strides = [1, 1]} : vector<8x128xf32> to vector<1x128xf32>
    %41 = vector.shape_cast %40 : vector<1x128xf32> to vector<1x1x128xf32>
    %42 = vector.broadcast %41 : vector<1x1x128xf32> to vector<10x16x128xf32>
    %43 = arith.mulf %39, %42 : vector<10x16x128xf32>
    %44 = arith.addf %37, %43 : vector<10x16x128xf32>
    %c6 = arith.constant 6 : index
    %c0_21 = arith.constant 0 : index
    %c0_22 = arith.constant 0 : index
    %c0_23 = arith.constant 0 : index
    %45 = vector.load %arg2[%c6, %c0_21, %c0_22, %c0_23] : memref<8x10x16x128xf32, #tpu.memory_space<vmem>>, vector<1x10x16x128xf32>
    %46 = vector.shape_cast %45 : vector<1x10x16x128xf32> to vector<10x16x128xf32>
    %47 = vector.extract_strided_slice %1 {offsets = [6, 0], sizes = [1, 128], strides = [1, 1]} : vector<8x128xf32> to vector<1x128xf32>
    %48 = vector.shape_cast %47 : vector<1x128xf32> to vector<1x1x128xf32>
    %49 = vector.broadcast %48 : vector<1x1x128xf32> to vector<10x16x128xf32>
    %50 = arith.mulf %46, %49 : vector<10x16x128xf32>
    %51 = arith.addf %44, %50 : vector<10x16x128xf32>
    %c7 = arith.constant 7 : index
    %c0_24 = arith.constant 0 : index
    %c0_25 = arith.constant 0 : index
    %c0_26 = arith.constant 0 : index
    %52 = vector.load %arg2[%c7, %c0_24, %c0_25, %c0_26] : memref<8x10x16x128xf32, #tpu.memory_space<vmem>>, vector<1x10x16x128xf32>
    %53 = vector.shape_cast %52 : vector<1x10x16x128xf32> to vector<10x16x128xf32>
    %54 = vector.extract_strided_slice %1 {offsets = [7, 0], sizes = [1, 128], strides = [1, 1]} : vector<8x128xf32> to vector<1x128xf32>
    %55 = vector.shape_cast %54 : vector<1x128xf32> to vector<1x1x128xf32>
    %56 = vector.broadcast %55 : vector<1x1x128xf32> to vector<10x16x128xf32>
    %57 = arith.mulf %53, %56 : vector<10x16x128xf32>
    %58 = arith.addf %51, %57 : vector<10x16x128xf32>
    %cst_27 = arith.constant 0.000000e+00 : f32
    %59 = vector.broadcast %cst_27 : f32 to vector<10x128xf32>
    %cst_28 = arith.constant 1.000000e-01 : f32
    %60 = vector.broadcast %cst_28 : f32 to vector<10x128xf32>
    %61 = vector.shape_cast %60 : vector<10x128xf32> to vector<10x1x128xf32>
    %62 = vector.broadcast %61 : vector<10x1x128xf32> to vector<10x16x128xf32>
    %63 = arith.mulf %62, %58 : vector<10x16x128xf32>
    %cst_29 = arith.constant dense<0.000000e+00> : vector<10x16xf32>
    %64 = vector.multi_reduction <add>, %63, %cst_29 [2] : vector<10x16x128xf32> to vector<10x16xf32>
    %65 = arith.mulf %64, %64 : vector<10x16xf32>
    %cst_30 = arith.constant dense<0.000000e+00> : vector<10xf32>
    %66 = vector.multi_reduction <add>, %65, %cst_30 [1] : vector<10x16xf32> to vector<10xf32>
    %67 = vector.shape_cast %66 : vector<10xf32> to vector<10x1xf32>
    %68 = math.sqrt %67 : vector<10x1xf32>
    %cst_31 = arith.constant 1.000000e+00 : f32
    %69 = vector.broadcast %cst_31 : f32 to vector<10x1xf32>
    %70 = arith.addf %69, %67 : vector<10x1xf32>
    %71 = arith.divf %67, %70 : vector<10x1xf32>
    %cst_32 = arith.constant 9.99999993E-9 : f32
    %72 = vector.broadcast %cst_32 : f32 to vector<10x1xf32>
    %73 = arith.addf %68, %72 : vector<10x1xf32>
    %74 = arith.divf %71, %73 : vector<10x1xf32>
    %75 = vector.broadcast %74 : vector<10x1xf32> to vector<10x16xf32>
    %76 = arith.mulf %75, %64 : vector<10x16xf32>
    %77 = vector.shape_cast %76 : vector<10x16xf32> to vector<10x16x1xf32>
    %78 = vector.broadcast %77 : vector<10x16x1xf32> to vector<10x16x128xf32>
    %79 = arith.mulf %78, %58 : vector<10x16x128xf32>
    %cst_33 = arith.constant dense<0.000000e+00> : vector<10x128xf32>
    %80 = vector.multi_reduction <add>, %79, %cst_33 [1] : vector<10x16x128xf32> to vector<10x128xf32>
    %81 = arith.addf %59, %80 : vector<10x128xf32>
    %cst_34 = arith.constant dense<0xFF800000> : vector<128xf32>
    %82 = vector.multi_reduction <maximumf>, %81, %cst_34 [0] : vector<10x128xf32> to vector<128xf32>
    %83 = vector.shape_cast %82 : vector<128xf32> to vector<1x128xf32>
    %84 = vector.broadcast %83 : vector<1x128xf32> to vector<10x128xf32>
    %85 = arith.subf %81, %84 : vector<10x128xf32>
    %86 = math.exp %85 : vector<10x128xf32>
    %cst_35 = arith.constant dense<0.000000e+00> : vector<128xf32>
    %87 = vector.multi_reduction <add>, %86, %cst_35 [0] : vector<10x128xf32> to vector<128xf32>
    %88 = vector.shape_cast %87 : vector<128xf32> to vector<1x128xf32>
    %89 = vector.broadcast %88 : vector<1x128xf32> to vector<10x128xf32>
    %90 = arith.divf %86, %89 : vector<10x128xf32>
    %91 = vector.shape_cast %90 : vector<10x128xf32> to vector<10x1x128xf32>
    %92 = vector.broadcast %91 : vector<10x1x128xf32> to vector<10x16x128xf32>
    %93 = arith.mulf %92, %58 : vector<10x16x128xf32>
    %cst_36 = arith.constant dense<0.000000e+00> : vector<10x16xf32>
    %94 = vector.multi_reduction <add>, %93, %cst_36 [2] : vector<10x16x128xf32> to vector<10x16xf32>
    %95 = arith.mulf %94, %94 : vector<10x16xf32>
    %cst_37 = arith.constant dense<0.000000e+00> : vector<10xf32>
    %96 = vector.multi_reduction <add>, %95, %cst_37 [1] : vector<10x16xf32> to vector<10xf32>
    %97 = vector.shape_cast %96 : vector<10xf32> to vector<10x1xf32>
    %98 = math.sqrt %97 : vector<10x1xf32>
    %cst_38 = arith.constant 1.000000e+00 : f32
    %99 = vector.broadcast %cst_38 : f32 to vector<10x1xf32>
    %100 = arith.addf %99, %97 : vector<10x1xf32>
    %101 = arith.divf %97, %100 : vector<10x1xf32>
    %cst_39 = arith.constant 9.99999993E-9 : f32
    %102 = vector.broadcast %cst_39 : f32 to vector<10x1xf32>
    %103 = arith.addf %98, %102 : vector<10x1xf32>
    %104 = arith.divf %101, %103 : vector<10x1xf32>
    %105 = vector.broadcast %104 : vector<10x1xf32> to vector<10x16xf32>
    %106 = arith.mulf %105, %94 : vector<10x16xf32>
    %107 = vector.shape_cast %106 : vector<10x16xf32> to vector<10x16x1xf32>
    %108 = vector.broadcast %107 : vector<10x16x1xf32> to vector<10x16x128xf32>
    %109 = arith.mulf %108, %58 : vector<10x16x128xf32>
    %cst_40 = arith.constant dense<0.000000e+00> : vector<10x128xf32>
    %110 = vector.multi_reduction <add>, %109, %cst_40 [1] : vector<10x16x128xf32> to vector<10x128xf32>
    %111 = arith.addf %81, %110 : vector<10x128xf32>
    %cst_41 = arith.constant dense<0xFF800000> : vector<128xf32>
    %112 = vector.multi_reduction <maximumf>, %111, %cst_41 [0] : vector<10x128xf32> to vector<128xf32>
    %113 = vector.shape_cast %112 : vector<128xf32> to vector<1x128xf32>
    %114 = vector.broadcast %113 : vector<1x128xf32> to vector<10x128xf32>
    %115 = arith.subf %111, %114 : vector<10x128xf32>
    %116 = math.exp %115 : vector<10x128xf32>
    %cst_42 = arith.constant dense<0.000000e+00> : vector<128xf32>
    %117 = vector.multi_reduction <add>, %116, %cst_42 [0] : vector<10x128xf32> to vector<128xf32>
    %118 = vector.shape_cast %117 : vector<128xf32> to vector<1x128xf32>
    %119 = vector.broadcast %118 : vector<1x128xf32> to vector<10x128xf32>
    %120 = arith.divf %116, %119 : vector<10x128xf32>
    %121 = vector.shape_cast %120 : vector<10x128xf32> to vector<10x1x128xf32>
    %122 = vector.broadcast %121 : vector<10x1x128xf32> to vector<10x16x128xf32>
    %123 = arith.mulf %122, %58 : vector<10x16x128xf32>
    %cst_43 = arith.constant dense<0.000000e+00> : vector<10x16xf32>
    %124 = vector.multi_reduction <add>, %123, %cst_43 [2] : vector<10x16x128xf32> to vector<10x16xf32>
    %125 = arith.mulf %124, %124 : vector<10x16xf32>
    %cst_44 = arith.constant dense<0.000000e+00> : vector<10xf32>
    %126 = vector.multi_reduction <add>, %125, %cst_44 [1] : vector<10x16xf32> to vector<10xf32>
    %127 = vector.shape_cast %126 : vector<10xf32> to vector<10x1xf32>
    %128 = math.sqrt %127 : vector<10x1xf32>
    %cst_45 = arith.constant 1.000000e+00 : f32
    %129 = vector.broadcast %cst_45 : f32 to vector<10x1xf32>
    %130 = arith.addf %129, %127 : vector<10x1xf32>
    %131 = arith.divf %127, %130 : vector<10x1xf32>
    %cst_46 = arith.constant 9.99999993E-9 : f32
    %132 = vector.broadcast %cst_46 : f32 to vector<10x1xf32>
    %133 = arith.addf %128, %132 : vector<10x1xf32>
    %134 = arith.divf %131, %133 : vector<10x1xf32>
    %135 = vector.broadcast %134 : vector<10x1xf32> to vector<10x16xf32>
    %136 = arith.mulf %135, %124 : vector<10x16xf32>
    %c0_47 = arith.constant 0 : index
    %c0_48 = arith.constant 0 : index
    %c0_49 = arith.constant 0 : index
    %137 = vector.load %arg3[%c0_47, %c0_48, %c0_49] : memref<1x10x16xf32, #tpu.memory_space<vmem>>, vector<1x10x16xf32>
    %138 = vector.shape_cast %137 : vector<1x10x16xf32> to vector<10x16xf32>
    %139 = vector.shape_cast %136 : vector<10x16xf32> to vector<1x10x16xf32>
    tpu.vector_store %arg3[%c0_47, %c0_48, %c0_49], %139 {strides = array<i32>} : memref<1x10x16xf32, #tpu.memory_space<vmem>>, vector<1x10x16xf32>,
    return
  }
  func.func @transform_0(%arg0: i32) -> (i32, i32, i32) {
    %c0_i32 = arith.constant 0 : i32
    %c0_i32_0 = arith.constant 0 : i32
    %c0_i32_1 = arith.constant 0 : i32
    return %arg0, %c0_i32, %c0_i32_0 : i32, i32, i32
  }
  func.func @transform_1(%arg0: i32) -> (i32, i32, i32, i32) {
    %c0_i32 = arith.constant 0 : i32
    %c0_i32_0 = arith.constant 0 : i32
    %c0_i32_1 = arith.constant 0 : i32
    %c0_i32_2 = arith.constant 0 : i32
    %c0_i32_3 = arith.constant 0 : i32
    return %c0_i32, %c0_i32_0, %c0_i32_1, %c0_i32_2 : i32, i32, i32, i32
  }
  func.func @transform_2(%arg0: i32) -> (i32, i32, i32) {
    %c0_i32 = arith.constant 0 : i32
    %c0_i32_0 = arith.constant 0 : i32
    %c0_i32_1 = arith.constant 0 : i32
    return %arg0, %c0_i32, %c0_i32_0 : i32, i32, i32
  }
}

</mosaic_0001>

<bundles_post_ra>
// kernel: capsule_net_forward.1
= control target key start
LH: loop header
LB: loop body
LE: loop exit
PB: predicated region body
PF: predicated region fallthrough
CT: control target
= control target key end

     0   :  { %7 = vsyncpa [#allocation3], 0  ;;  %s3616_s0 = inlined_call_operand.hbm [shape: f32[2,8,128], index: 0, kind: input, shape index: {}]   ;;  %s3617_s1 = inlined_call_operand.hbm [shape: f32[8,10,16,128], index: 1, kind: input, shape index: {}]   ;;  %s3618_s2 = inlined_call_operand.vmem [shape: f32[2,10,16], index: 2, kind: output, shape index: {}]  }
   0x1   :  { %9 = vsyncpa [#allocation3 + $0x1], 0 }
   0x2   :  { %10 = vsyncpa [#allocation5], 0  ;;  %s2790_s9 = smov 0   ;;  %s2792_s10 = smov 0  }
   0x3   :  { %s2794_s11 = smov 0   ;;  %s2796_s12 = smov 0  }
   0x4 LB: > { %s2809_s13 = sadd.s32 4294967295, %s2769_s12   ;;  %p36_p0 = scmp.ne.s32.totalorder %s2761_s10, %s2757_s9  ;;  %s2769_s12 = sphi %s2796_s12, %s3670_s12   ;;  %s2765_s11 = sphi %s2794_s11, %s3669_s11   ;;  %s2761_s10 = sphi %s2792_s10, %s3668_s10   ;;  %s2757_s9 = sphi %s2790_s9, %s3667_s9  }
   0x5   : > { %p3619_p1 = scmp.eq.s32.totalorder %s2809_s13, 0  ;;  %p2532_p2 = scmp.ge.s32.totalorder %s2769_s12, 1 }
   0x6   : > { %p94_p3 = scmp.lt.s32.totalorder %s2769_s12, 3  ;;  %s2771_s16 = smov [#allocation4]  }
   0x7   : > { %p2817_p4 = por %p3619_p1, %p36_p0  ;;  %s106_s17 = sshll.u32 %s2771_s16, 4  ;;  %s107_s17 = int_to_ptr.vmem [resolvable:$true] %s106_s17 }
   0x8   : > { %p2821_p5 = pnand %p2532_p2, %p94_p3  ;;  %s2834_s19 = sadd.s32 1, %s2769_s12  }
   0x9   : > { %s3637_s14 = scalar_select %p2817_p4, 1, 0 }
   0xa   : > { %s3638_s15 = scalar_select %p2821_p5, 1, 0 }
   0xb   : > { %p2551_p6 = pneg %p2821_p5  ;;  %s23_s20 = sadd.s32 1, %s2765_s11 }
   0xc   : > { %s20_s21 = ssub.s32 %s2769_s12, %s2834_s19  ;;  %s2688_s22 = scalar_lea.vmem %s107_s17, 20480 }
   0xd   : > { %p2829_p7 = pnand %p2551_p6, %p3619_p1  ;;  %p2689_p9 = scmp.ne.s32.totalorder %s107_s17, %s2688_s22 }
   0xe   : > { %p2696_p12 = scmp.lt.s32.totalorder %s107_s17, %s107_s17  ;;  %p2697_p13 = scmp.lt.s32.totalorder %s2688_s22, %s2688_s22 }
   0xf   : > { %p2679_p8 = pneg %p2829_p7 }
  0x10   : > { %p2698_p0 = por %p2697_p13, %p2696_p12 }
  0x11   : > { %p2691_p10 = pnand %p2689_p9, %p2679_p8 }
  0x13   : > { %p2692_p11 = pneg %p2691_p10 }
  0x15   : > { %p2699_p2 = pnand %p2698_p0, %p2692_p11 }
  0x17   : > { %2702 = shalt.err (!%p2699_p2)
}
  0x18   : > { %s2772_s23 = smov 128   ;;  %s2773_s24 = smov 8  }
  0x19   : > { %2554 = dma.hbm_to_vmem [thread:$0]  (!%p2829_p7), %s3617_s1, 20480, %s107_s17, [#allocation5], %s2772_s23, %s2772_s23, %s2773_s24  }
  0x1a   : > { %p21_p3 = scmp.eq.s32.totalorder %s20_s21, 0  ;;  %p30_p6 = scmp.ne.s32.totalorder %s2765_s11, %s2761_s10 }
  0x1b   : > { %p31_p8 = scmp.eq.s32.totalorder %s2769_s12, 0  ;;  %p2560_p9 = scmp.lt.s32.totalorder %s2769_s12, 2 }
  0x1c   : > { %s2851_s27 = scalar_select %p21_p3, %s2765_s11, %s23_s20  }
  0x1d   : > { %p32_p10 = por %p31_p8, %p30_p6  ;;  %s120_s28 = sand.u32 1, %s2765_s11  }
  0x1e   : > { %s2535_s29 = sshll.u32 %s120_s28, 3  ;;  %s2536_s30 = sshll.u32 %s2769_s12, 7 }
  0x1f   : > { %s2858_s5 = scalar_lea.hbm %s3616_s0, %s2536_s30  ;;  %s124_s6 = scalar_lea.vmem [#allocation2], %s2535_s29 }
  0x20   : > { %s131_s7 = sshll.u32 %s124_s6, 4  ;;  %p2860_p7 = pnand %p2560_p9, %p32_p10  ;;  %s132_s7 = int_to_ptr.vmem [resolvable:$true] %s131_s7 }
  0x21   : > { %s121_s9 = scalar_lea.sflag [#allocation3], %s120_s28  ;;  %s2703_s16 = scalar_lea.hbm %s2858_s5, 128 }
  0x22   : > { %p2704_p11 = scmp.ne.s32.totalorder %s2858_s5, %s2703_s16  ;;  %p2705_p12 = pneg %p2860_p7 }
  0x23   : > { %s2708_s18 = scalar_lea.hbm %s3616_s0, 256  ;;  %p2709_p2 = scmp.lt.s32.totalorder %s2858_s5, %s3616_s0 }
  0x24   : > { %p2706_p13 = pnand %p2705_p12, %p2704_p11  ;;  %p2710_p3 = scmp.lt.s32.totalorder %s2708_s18, %s2703_s16 }
  0x26   : > { %p2707_p0 = pneg %p2706_p13  ;;  %p2711_p6 = por %p2710_p3, %p2709_p2 }
  0x28   : > { %p2712_p8 = pnand %p2711_p6, %p2707_p0 }
  0x2a   : > { %2715 = shalt.err (!%p2712_p8)
}
  0x2b   : > { %s2716_s22 = scalar_lea.vmem %s132_s7, 128  ;;  %s2774_s23 = smov [#allocation2]  }
  0x2c   : > { %p2717_p9 = scmp.ne.s32.totalorder %s132_s7, %s2716_s22  ;;  %s2721_s24 = sshll.u32 %s2774_s23, 4  ;;  %s2722_s24 = int_to_ptr.vmem [resolvable:$false] %s2721_s24 }
  0x2d   : > { %s2723_s25 = scalar_lea.vmem %s2722_s24, 256  ;;  %p2724_p11 = scmp.lt.s32.totalorder %s132_s7, %s2722_s24 }
  0x2e   : > { %p2719_p10 = pnand %p2717_p9, %p2705_p12  ;;  %p2725_p13 = scmp.lt.s32.totalorder %s2723_s25, %s2716_s22 }
  0x30   : > { %p2720_p1 = pneg %p2719_p10  ;;  %p2726_p4 = por %p2725_p13, %p2724_p11 }
  0x32   : > { %p2727_p5 = pnand %p2726_p4, %p2720_p1 }
  0x34   : > { %2730 = shalt.err (!%p2727_p5)
}
  0x35   : > { %2558 = dma.hbm_to_vmem [thread:$0]  (!%p2860_p7), %s2858_s5, 128, %s132_s7, %s121_s9  }
  0x36   : > { %p3641_p0 = scmp.ne.s32.totalorder %s3638_s15, 0 }
  0x38   : > { %140 = sbr.rel (%p3641_p0) target bundleno = 1704 (0x6a8), region = 28 }
  0x3d   : > { %s142_s26 = sand.u32 1, %s2761_s10   ;;  %p3642_p12 = scmp.ne.s32.totalorder %s3637_s14, 0 }
  0x3e   : > { %s2538_s28 = sshll.u32 %s142_s26, 3  ;;  %s143_s29 = scalar_lea.sflag [#allocation3], %s142_s26 }
  0x3f   : > { %s146_s30 = scalar_lea.vmem [#allocation2], %s2538_s28 }
  0x40   : > { %2748 = dma.done.wait (%p3642_p12), %s143_s29, 128  }
  0x41   : > { %2750 = vsyncadd (%p3642_p12), %s143_s29, 4294967168  ;;  %p3643_p1 = scmp.eq.s32.totalorder %s2809_s13, 0 }
  0x43   : > { %2752 = dma.done.wait (%p3643_p1), [#allocation5], 20480   ;;  %p3644_p4 = pmov %p3643_p1 }
  0x44   : > { %v197_v0 = vlaneseq  ;;  %v176_v12 = vld [vmem:[%s146_s30] sm:$0xff]  ;;  %v177_v33 = vld [vmem:[#allocation4] sm:$0xff]  ;;  %vm807_vm0 = vcmask 130112   ;;  %vm890_vm1 = vcmask 1041409   ;;  %vm892_vm2 = vcmask 1042434   ;;  %p171_p5 = scmp.lt.s32.totalorder %s2809_s13, 1 }
  0x45   : > { %2754 = vsyncadd (%p3644_p4), [#allocation5], 4294946816  ;;  %v179_v13 = vld [vmem:[#allocation4 + $0x10] sm:$0xff]  ;;  %v242_v34 = vld [vmem:[#allocation4 + $0xa0] sm:$0xff]  ;;  %vm894_vm3 = vcmask 1043459   ;;  %vm896_vm4 = vcmask 1044484  }
  0x46   : > { %v198_v1 = vshrl.u32 %v197_v0, 7  ;;  %v797_v2 = vand.u32 127, %v197_v0  ;;  %v244_v14 = vld [vmem:[#allocation4 + $0xb0] sm:$0xff]  ;;  %v307_v35 = vld [vmem:[#allocation4 + $0x140] sm:$0xff]  ;;  %v180_v46 = vld [vmem:[#allocation4 + $0x18] sm:$0xff]  ;;  %vm898_vm5 = vcmask 1045509  }
  0x47   : > { %v309_v18 = vld [vmem:[#allocation4 + $0x150] sm:$0xff]  ;;  %v372_v38 = vld [vmem:[#allocation4 + $0x1e0] sm:$0xff]  ;;  %v245_v52 = vld [vmem:[#allocation4 + $0xb8] sm:$0xff]  ;;  %vm900_vm6 = vcmask 1046534   ;;  %vm902_vm7 = vcmask 1047559   ;;  %vm907_vm8 = vcmask 130048  }
  0x48   : > { %v2889_v3 = vsub.s32 0, %v198_v1  ;;  %v2891_v4 = vsub.s32 1, %v198_v1  ;;  %v2893_v5 = vsub.s32 2, %v198_v1  ;;  %v2895_v6 = vsub.s32 3, %v198_v1  ;;  %v374_v20 = vld [vmem:[#allocation4 + $0x1f0] sm:$0xff]  ;;  %v437_v39 = vld [vmem:[#allocation4 + $0x280] sm:$0xff] }
  0x49   : > { %v2897_v7 = vsub.s32 4, %v198_v1  ;;  %v2899_v8 = vsub.s32 5, %v198_v1  ;;  %v2901_v9 = vsub.s32 6, %v198_v1  ;;  %v2903_v10 = vsub.s32 7, %v198_v1  ;;  %v439_v22 = vld [vmem:[#allocation4 + $0x290] sm:$0xff]  ;;  %v502_v44 = vld [vmem:[#allocation4 + $0x320] sm:$0xff] }
  0x4a   : > { %3645 = vst [vmem:[#allocation8_spill] sm:$0xff] %v2895_v6  ;;  %v2905_v11 = vsub.s32 %v797_v2, %v198_v1  ;;  %v802_v15 = vadd.s32 4294967288, %v797_v2  ;;  %v2908_v16 = vrot.slane %v176_v12, %v2889_v3  ;;  %v2911_v17 = vrot.slane %v176_v12, %v2891_v4  ;;  %v504_v24 = vld [vmem:[#allocation4 + $0x330] sm:$0xff]  ;;  %v567_v45 = vld [vmem:[#allocation4 + $0x3c0] sm:$0xff]  ;;  %v310_v53 = vld [vmem:[#allocation4 + $0x158] sm:$0xff]  ;;  %s3672_s13 = smov (!%p171_p5, %s2809_s13), 1 }
  0x4b   : > { %3646 = vst [vmem:[#allocation9_spill] sm:$0xff] %v2901_v9  ;;  %3647 = vst [vmem:[#allocation10_spill] sm:$0xff] %v2903_v10  ;;  %v2914_v19 = vrot.slane %v176_v12, %v2893_v5  ;;  %v2917_v21 = vrot.slane %v176_v12, %v2895_v6  ;;  %v2920_v23 = vrot.slane %v176_v12, %v2897_v7  ;;  %v569_v26 = vld [vmem:[#allocation4 + $0x3d0] sm:$0xff]  ;;  %v632_v51 = vld [vmem:[#allocation4 + $0x460] sm:$0xff]  ;;  %vm911_vm9 = vcmask 123904   ;;  %s2544_s14 = sshll.u32 %s3672_s13, 4 }
  0x4c   : > { %3648 = vst [vmem:[#allocation11_spill] sm:$0xff] %v2905_v11  ;;  %v2923_v25 = vrot.slane %v176_v12, %v2899_v8  ;;  %v2926_v27 = vrot.slane %v176_v12, %v2901_v9  ;;  %v634_v28 = vld [vmem:[#allocation4 + $0x470] sm:$0xff]  ;;  %v2929_v29 = vrot.slane %v176_v12, %v2903_v10  ;;  %v203_v30 = vmul.f32 %v2908_v16, %v179_v13  ;;  %v375_v58 = vld [vmem:[#allocation4 + $0x1f8] sm:$0xff]  ;;  %v243_v2 = vld [vmem:[#allocation4 + $0xa8] sm:$0xff]  ;;  %s175_s4 = scalar_lea.vmem %s3618_s2, %s2544_s14 }
  0x4d   : > { %v268_v31 = vmul.f32 %v2911_v17, %v244_v14  ;;  %v333_v32 = vmul.f32 %v2914_v19, %v309_v18  ;;  %v398_v36 = vmul.f32 %v2917_v21, %v374_v20  ;;  %v463_v37 = vmul.f32 %v2920_v23, %v439_v22  ;;  %v440_v59 = vld [vmem:[#allocation4 + $0x298] sm:$0xff]  ;;  %v308_v22 = vld [vmem:[#allocation4 + $0x148] sm:$0xff] }
  0x4e   : > { %v2936_v41 = vsub.s32 %v802_v15, %v198_v1  ;;  %v201_v42 = vmul.f32 %v2908_v16, %v177_v33  ;;  %v266_v43 = vmul.f32 %v2911_v17, %v242_v34  ;;  %v528_v47 = vmul.f32 %v2923_v25, %v504_v24  ;;  %v505_v0 = vld [vmem:[#allocation4 + $0x338] sm:$0xff]  ;;  %v178_v1 = vld [vmem:[#allocation4 + $0x8] sm:$0xff] }
  0x4f   : > { %v288_v40 = vadd.f32 %v268_v31, %v203_v30  ;;  %v593_v48 = vmul.f32 %v2926_v27, %v569_v26  ;;  %v2943_v49 = vmul.f32 %v2929_v29, %v634_v28  ;;  %v331_v50 = vmul.f32 %v2914_v19, %v307_v35  ;;  %v570_v18 = vld [vmem:[#allocation4 + $0x3d8] sm:$0xff]  ;;  %v373_v31 = vld [vmem:[#allocation4 + $0x1e8] sm:$0xff] }
  0x50   : > { %3649 = vst [vmem:[#allocation12_spill] sm:$0xff] %v2936_v41  ;;  %v286_v55 = vadd.f32 %v266_v43, %v201_v42  ;;  %v396_v56 = vmul.f32 %v2917_v21, %v372_v38  ;;  %v461_v57 = vmul.f32 %v2920_v23, %v437_v39  ;;  %v526_v60 = vmul.f32 %v2923_v25, %v502_v44  ;;  %v635_v20 = vld [vmem:[#allocation4 + $0x478] sm:$0xff]  ;;  %v182_v38 = vld [vmem:[#allocation4 + $0x28] sm:$0xff] }
  0x51   : > { %v353_v54 = vadd.f32 %v333_v32, %v288_v40  ;;  %v204_v61 = vmul.f32 %v2908_v16, %v180_v46  ;;  %v269_v62 = vmul.f32 %v2911_v17, %v245_v52  ;;  %v334_v63 = vmul.f32 %v2914_v19, %v310_v53  ;;  %v247_v39 = vld [vmem:[#allocation4 + $0xc8] sm:$0xff] }
  0x52   : > { %v351_v13 = vadd.f32 %v331_v50, %v286_v55  ;;  %v591_v14 = vmul.f32 %v2926_v27, %v567_v45  ;;  %v656_v15 = vmul.f32 %v2929_v29, %v632_v51  ;;  %v399_v26 = vmul.f32 %v2917_v21, %v375_v58  ;;  %v312_v45 = vld [vmem:[#allocation4 + $0x168] sm:$0xff] }
  0x53   : > { %v418_v12 = vadd.f32 %v398_v36, %v353_v54  ;;  %v289_v24 = vadd.f32 %v269_v62, %v204_v61  ;;  %v464_v28 = vmul.f32 %v2920_v23, %v440_v59  ;;  %v202_v30 = vmul.f32 %v2908_v16, %v178_v1  ;;  %v438_v36 = vld [vmem:[#allocation4 + $0x288] sm:$0xff] }
  0x54   : > { %v416_v33 = vadd.f32 %v396_v56, %v351_v13  ;;  %v267_v34 = vmul.f32 %v2911_v17, %v243_v2  ;;  %v332_v35 = vmul.f32 %v2914_v19, %v308_v22  ;;  %v529_v42 = vmul.f32 %v2923_v25, %v505_v0  ;;  %v503_v52 = vld [vmem:[#allocation4 + $0x328] sm:$0xff] }
  0x55   : > { %v483_v32 = vadd.f32 %v463_v37, %v418_v12  ;;  %v354_v40 = vadd.f32 %v334_v63, %v289_v24  ;;  %v594_v43 = vmul.f32 %v2926_v27, %v570_v18  ;;  %v659_v44 = vmul.f32 %v2929_v29, %v635_v20  ;;  %v377_v53 = vld [vmem:[#allocation4 + $0x208] sm:$0xff]  ;;  %v181_v18 = vld [vmem:[#allocation4 + $0x20] sm:$0xff] }
  0x56   : > { %v481_v50 = vadd.f32 %v461_v57, %v416_v33  ;;  %v287_v51 = vadd.f32 %v267_v34, %v202_v30  ;;  %v397_v37 = vmul.f32 %v2917_v21, %v373_v31  ;;  %v462_v55 = vmul.f32 %v2920_v23, %v438_v36  ;;  %v568_v56 = vld [vmem:[#allocation4 + $0x3c8] sm:$0xff] }
  0x57   : > { %v548_v46 = vadd.f32 %v528_v47, %v483_v32  ;;  %v419_v54 = vadd.f32 %v399_v26, %v354_v40  ;;  %v206_v58 = vmul.f32 %v2908_v16, %v182_v38  ;;  %v271_v59 = vmul.f32 %v2911_v17, %v247_v39  ;;  %v442_v47 = vld [vmem:[#allocation4 + $0x2a8] sm:$0xff]  ;;  %v311_v26 = vld [vmem:[#allocation4 + $0x160] sm:$0xff] }
  0x58   : > { %v546_v62 = vadd.f32 %v526_v60, %v481_v50  ;;  %v352_v63 = vadd.f32 %v332_v35, %v287_v51  ;;  %v336_v0 = vmul.f32 %v2914_v19, %v312_v45  ;;  %v507_v57 = vld [vmem:[#allocation4 + $0x348] sm:$0xff]  ;;  %v527_v2 = vmul.f32 %v2923_v25, %v503_v52  ;;  %v246_v60 = vld [vmem:[#allocation4 + $0xc0] sm:$0xff]  ;;  %v184_v51 = vld [vmem:[#allocation4 + $0x38] sm:$0xff] }
  0x59   : > { %v613_v61 = vadd.f32 %v593_v48, %v548_v46  ;;  %v484_v1 = vadd.f32 %v464_v28, %v419_v54  ;;  %v291_v12 = vadd.f32 %v271_v59, %v206_v58  ;;  %v401_v13 = vmul.f32 %v2917_v21, %v377_v53  ;;  %v633_v31 = vld [vmem:[#allocation4 + $0x468] sm:$0xff]  ;;  %v376_v38 = vld [vmem:[#allocation4 + $0x200] sm:$0xff]  ;;  %v249_v54 = vld [vmem:[#allocation4 + $0xd8] sm:$0xff] }
  0x5a   : > { %v611_v22 = vadd.f32 %v591_v14, %v546_v62  ;;  %v417_v24 = vadd.f32 %v397_v37, %v352_v63  ;;  %v592_v48 = vmul.f32 %v2926_v27, %v568_v56  ;;  %v466_v28 = vmul.f32 %v2920_v23, %v442_v47  ;;  %v572_v34 = vld [vmem:[#allocation4 + $0x3e8] sm:$0xff]  ;;  %v441_v50 = vld [vmem:[#allocation4 + $0x2a0] sm:$0xff] }
  0x5b   : > { %v2970_v20 = vadd.f32 %v2943_v49, %v613_v61  ;;  %v549_v30 = vadd.f32 %v529_v42, %v484_v1  ;;  %v356_v32 = vadd.f32 %v336_v0, %v291_v12  ;;  %v531_v33 = vmul.f32 %v2923_v25, %v507_v57  ;;  %v637_v45 = vld [vmem:[#allocation4 + $0x488] sm:$0xff]  ;;  %v506_v59 = vld [vmem:[#allocation4 + $0x340] sm:$0xff]  ;;  %v314_v61 = vld [vmem:[#allocation4 + $0x178] sm:$0xff] }
  0x5c   : > { %v2976_v36 = vadd.f32 %v656_v15, %v611_v22  ;;  %v482_v49 = vadd.f32 %v462_v55, %v417_v24  ;;  %v205_v14 = vmul.f32 %v2908_v16, %v181_v18  ;;  %v270_v42 = vmul.f32 %v2911_v17, %v246_v60  ;;  %v379_v57 = vld [vmem:[#allocation4 + $0x218] sm:$0xff]  ;;  %v571_v12 = vld [vmem:[#allocation4 + $0x3e0] sm:$0xff]  ;;  %v183_v22 = vld [vmem:[#allocation4 + $0x30] sm:$0xff] }
  0x5d   : > { %v698_v35 = vmul.f32 0.1, %v2970_v20  ;;  %v614_v39 = vadd.f32 %v594_v43, %v549_v30  ;;  %v421_v40 = vadd.f32 %v401_v13, %v356_v32  ;;  %v335_v46 = vmul.f32 %v2914_v19, %v311_v26  ;;  %v444_v18 = vld [vmem:[#allocation4 + $0x2b8] sm:$0xff]  ;;  %v636_v60 = vld [vmem:[#allocation4 + $0x480] sm:$0xff]  ;;  %v248_v30 = vld [vmem:[#allocation4 + $0xd0] sm:$0xff] }
  0x5e   : > { %v696_v37 = vmul.f32 0.1, %v2976_v36  ;;  %v547_v52 = vadd.f32 %v527_v2, %v482_v49  ;;  %v657_v15 = vmul.f32 %v2929_v29, %v633_v31  ;;  %v596_v53 = vmul.f32 %v2926_v27, %v572_v34  ;;  %v509_v34 = vld [vmem:[#allocation4 + $0x358] sm:$0xff]  ;;  %v378_v49 = vld [vmem:[#allocation4 + $0x210] sm:$0xff] }
  0x5f   : > { %720 = vadd.xlane.f32.xlu1 %v698_v35  ;;  %v2984_v55 = vadd.f32 %v659_v44, %v614_v39  ;;  %v486_v43 = vadd.f32 %v466_v28, %v421_v40  ;;  %v290_v56 = vadd.f32 %v270_v42, %v205_v14  ;;  %v400_v58 = vmul.f32 %v2917_v21, %v376_v38  ;;  %v313_v35 = vld [vmem:[#allocation4 + $0x170] sm:$0xff]  ;;  %v574_v40 = vld [vmem:[#allocation4 + $0x3f8] sm:$0xff] }
  0x60   : > { %716 = vadd.xlane.f32.xlu0 %v696_v37  ;;  %v612_v62 = vadd.f32 %v592_v48, %v547_v52  ;;  %v661_v63 = vmul.f32 %v2929_v29, %v637_v45  ;;  %v465_v0 = vmul.f32 %v2920_v23, %v441_v50  ;;  %v208_v47 = vmul.f32 %v2908_v16, %v184_v51  ;;  %v443_v37 = vld [vmem:[#allocation4 + $0x2b0] sm:$0xff]  ;;  %v186_v52 = vld [vmem:[#allocation4 + $0x48] sm:$0xff] }
  0x61   : > { %v699_v1 = vmul.f32 0.1, %v2984_v55  ;;  %v551_v2 = vadd.f32 %v531_v33, %v486_v43  ;;  %v355_v44 = vadd.f32 %v335_v46, %v290_v56  ;;  %v273_v13 = vmul.f32 %v2911_v17, %v249_v54 }
  0x62   : > { %v2992_v24 = vadd.f32 %v657_v15, %v612_v62  ;;  %v530_v48 = vmul.f32 %v2923_v25, %v506_v59  ;;  %v338_v26 = vmul.f32 %v2914_v19, %v314_v61  ;;  %v403_v33 = vmul.f32 %v2917_v21, %v379_v57  ;;  %v251_v15 = vld [vmem:[#allocation4 + $0xe8] sm:$0xff] }
  0x63   : > { %722 = vadd.xlane.f32.xlu1 %v699_v1  ;;  %v616_v31 = vadd.f32 %v596_v53, %v551_v2  ;;  %v420_v32 = vadd.f32 %v400_v58, %v355_v44  ;;  %v293_v28 = vadd.f32 %v273_v13, %v208_v47  ;;  %v595_v38 = vmul.f32 %v2926_v27, %v571_v12  ;;  %v316_v58 = vld [vmem:[#allocation4 + $0x188] sm:$0xff]  ;;  %v508_v47 = vld [vmem:[#allocation4 + $0x350] sm:$0xff] }
  0x64   : > { %v697_v14 = vmul.f32 0.1, %v2992_v24  ;;  %v468_v39 = vmul.f32 %v2920_v23, %v444_v18  ;;  %v207_v45 = vmul.f32 %v2908_v16, %v183_v22  ;;  %v272_v51 = vmul.f32 %v2911_v17, %v248_v30  ;;  %v381_v57 = vld [vmem:[#allocation4 + $0x228] sm:$0xff]  ;;  %v573_v44 = vld [vmem:[#allocation4 + $0x3f0] sm:$0xff]  ;;  %v185_v30 = vld [vmem:[#allocation4 + $0x40] sm:$0xff] }
  0x65   : > { %v3001_v42 = vadd.f32 %v661_v63, %v616_v31  ;;  %v485_v46 = vadd.f32 %v465_v0, %v420_v32  ;;  %v358_v50 = vadd.f32 %v338_v26, %v293_v28  ;;  %v660_v53 = vmul.f32 %v2929_v29, %v636_v60  ;;  %v639_v63 = vld [vmem:[#allocation4 + $0x498] sm:$0xff]  ;;  %v446_v26 = vld [vmem:[#allocation4 + $0x2c8] sm:$0xff]  ;;  %v250_v31 = vld [vmem:[#allocation4 + $0xe0] sm:$0xff] }
  0x66   : > { %718 = vadd.xlane.f32.xlu0 %v697_v14  ;;  %v533_v54 = vmul.f32 %v2923_v25, %v509_v34  ;;  %v337_v43 = vmul.f32 %v2914_v19, %v313_v35  ;;  %v402_v56 = vmul.f32 %v2917_v21, %v378_v49  ;;  %v292_v0 = vadd.f32 %v272_v51, %v207_v45  ;;  %v315_v35 = vld [vmem:[#allocation4 + $0x180] sm:$0xff] }
  0x67   : > { %v701_v59 = vmul.f32 0.1, %v3001_v42  ;;  %v550_v61 = vadd.f32 %v530_v48, %v485_v46  ;;  %v423_v62 = vadd.f32 %v403_v33, %v358_v50  ;;  %v598_v1 = vmul.f32 %v2926_v27, %v574_v40  ;;  %v380_v45 = vld [vmem:[#allocation4 + $0x220] sm:$0xff]  ;;  %v638_v46 = vld [vmem:[#allocation4 + $0x490] sm:$0xff] }
  0x68   : > { %v467_v2 = vmul.f32 %v2920_v23, %v443_v37  ;;  %v210_v12 = vmul.f32 %v2908_v16, %v186_v52  ;;  %v275_v13 = vmul.f32 %v2911_v17, %v251_v15  ;;  %v357_v60 = vadd.f32 %v337_v43, %v292_v0  ;;  %v576_v37 = vld [vmem:[#allocation4 + $0x408] sm:$0xff] }
  0x69   : > { %726 = vadd.xlane.f32.xlu1 %v701_v59  ;;  %v615_v18 = vadd.f32 %v595_v38, %v550_v61  ;;  %v488_v22 = vadd.f32 %v468_v39, %v423_v62  ;;  %v340_v48 = vmul.f32 %v2914_v19, %v316_v58  ;;  %v663_v32 = vmul.f32 %v2929_v29, %v639_v63  ;;  %v511_v39 = vld [vmem:[#allocation4 + $0x368] sm:$0xff]  ;;  %v188_v59 = vld [vmem:[#allocation4 + $0x58] sm:$0xff] }
  0x6a   : > { %v532_v28 = vmul.f32 %v2923_v25, %v508_v47  ;;  %v295_v33 = vadd.f32 %v275_v13, %v210_v12  ;;  %v405_v34 = vmul.f32 %v2917_v21, %v381_v57  ;;  %v422_v40 = vadd.f32 %v402_v56, %v357_v60  ;;  %v445_v56 = vld [vmem:[#allocation4 + $0x2c0] sm:$0xff]  ;;  %v253_v47 = vld [vmem:[#allocation4 + $0xf8] sm:$0xff] }
  0x6b   : > { %v3017_v49 = vadd.f32 %v660_v53, %v615_v18  ;;  %v553_v14 = vadd.f32 %v533_v54, %v488_v22  ;;  %v597_v38 = vmul.f32 %v2926_v27, %v573_v44  ;;  %v470_v51 = vmul.f32 %v2920_v23, %v446_v26  ;;  %v318_v57 = vld [vmem:[#allocation4 + $0x198] sm:$0xff]  ;;  %v510_v18 = vld [vmem:[#allocation4 + $0x360] sm:$0xff] }
  0x6c   : > { %v360_v50 = vadd.f32 %v340_v48, %v295_v33  ;;  %v209_v52 = vmul.f32 %v2908_v16, %v185_v30  ;;  %v274_v15 = vmul.f32 %v2911_v17, %v250_v31  ;;  %v487_v53 = vadd.f32 %v467_v2, %v422_v40  ;;  %v641_v2 = vld [vmem:[#allocation4 + $0x4a8] sm:$0xff]  ;;  %v575_v26 = vld [vmem:[#allocation4 + $0x400] sm:$0xff]  ;;  %v383_v31 = vld [vmem:[#allocation4 + $0x238] sm:$0xff] }
  0x6d   : > { %v700_v43 = vmul.f32 0.1, %v3017_v49  ;;  %v618_v58 = vadd.f32 %v598_v1, %v553_v14  ;;  %v339_v54 = vmul.f32 %v2914_v19, %v315_v35  ;;  %v535_v62 = vmul.f32 %v2923_v25, %v511_v39  ;;  %v448_v35 = vld [vmem:[#allocation4 + $0x2d8] sm:$0xff]  ;;  %v187_v14 = vld [vmem:[#allocation4 + $0x50] sm:$0xff] }
  0x6e   : > { %v425_v61 = vadd.f32 %v405_v34, %v360_v50  ;;  %v294_v63 = vadd.f32 %v274_v15, %v209_v52  ;;  %v404_v0 = vmul.f32 %v2917_v21, %v380_v45  ;;  %v552_v12 = vadd.f32 %v532_v28, %v487_v53  ;;  %v252_v50 = vld [vmem:[#allocation4 + $0xf0] sm:$0xff] }
  0x6f   : > { %724 = vadd.xlane.f32.xlu0 %v700_v43  ;;  %v3027_v44 = vadd.f32 %v663_v32, %v618_v58  ;;  %v662_v13 = vmul.f32 %v2929_v29, %v638_v46  ;;  %v600_v1 = vmul.f32 %v2926_v27, %v576_v37  ;;  %v469_v48 = vmul.f32 %v2920_v23, %v445_v56  ;;  %v513_v58 = vld [vmem:[#allocation4 + $0x378] sm:$0xff] }
  0x70   : > { %v490_v22 = vadd.f32 %v470_v51, %v425_v61  ;;  %v359_v60 = vadd.f32 %v339_v54, %v294_v63  ;;  %v212_v30 = vmul.f32 %v2908_v16, %v188_v59  ;;  %v617_v34 = vadd.f32 %v597_v38, %v552_v12  ;;  %v317_v51 = vld [vmem:[#allocation4 + $0x190] sm:$0xff]  ;;  %v640_v38 = vld [vmem:[#allocation4 + $0x4a0] sm:$0xff]  ;;  %v578_v59 = vld [vmem:[#allocation4 + $0x418] sm:$0xff] }
  0x71   : > { %v703_v33 = vmul.f32 0.1, %v3027_v44  ;;  %v277_v32 = vmul.f32 %v2911_v17, %v253_v47  ;;  %v342_v28 = vmul.f32 %v2914_v19, %v318_v57  ;;  %v665_v39 = vmul.f32 %v2929_v29, %v641_v2  ;;  %v447_v12 = vld [vmem:[#allocation4 + $0x2d0] sm:$0xff] }
  0x72   : > { %v555_v40 = vadd.f32 %v535_v62, %v490_v22  ;;  %v424_v45 = vadd.f32 %v404_v0, %v359_v60  ;;  %v534_v46 = vmul.f32 %v2923_v25, %v510_v18  ;;  %v3038_v37 = vadd.f32 %v662_v13, %v617_v34  ;;  %v382_v62 = vld [vmem:[#allocation4 + $0x230] sm:$0xff]  ;;  %v190_v13 = vld [vmem:[#allocation4 + $0x68] sm:$0xff] }
  0x73   : > { %730 = vadd.xlane.f32.xlu1 %v703_v33  ;;  %v599_v52 = vmul.f32 %v2926_v27, %v575_v26  ;;  %v297_v15 = vadd.f32 %v277_v32, %v212_v30  ;;  %v407_v43 = vmul.f32 %v2917_v21, %v383_v31  ;;  %v472_v56 = vmul.f32 %v2920_v23, %v448_v35  ;;  %v255_v60 = vld [vmem:[#allocation4 + $0x108] sm:$0xff]  ;;  %v643_v31 = vld [vmem:[#allocation4 + $0x4b8] sm:$0xff]  ;;  %v512_v32 = vld [vmem:[#allocation4 + $0x370] sm:$0xff] }
  0x74   : > { %v620_v53 = vadd.f32 %v600_v1, %v555_v40  ;;  %v489_v54 = vadd.f32 %v469_v48, %v424_v45  ;;  %v211_v61 = vmul.f32 %v2908_v16, %v187_v14  ;;  %v702_v63 = vmul.f32 0.1, %v3038_v37  ;;  %v320_v48 = vld [vmem:[#allocation4 + $0x1a8] sm:$0xff] }
  0x75   : > { %v362_v0 = vadd.f32 %v342_v28, %v297_v15  ;;  %v276_v47 = vmul.f32 %v2911_v17, %v252_v50  ;;  %v341_v57 = vmul.f32 %v2914_v19, %v317_v51  ;;  %v664_v1 = vmul.f32 %v2929_v29, %v640_v38  ;;  %v577_v28 = vld [vmem:[#allocation4 + $0x410] sm:$0xff]  ;;  %v385_v45 = vld [vmem:[#allocation4 + $0x248] sm:$0xff] }
  0x76   : > { %v3047_v2 = vadd.f32 %v665_v39, %v620_v53  ;;  %v554_v18 = vadd.f32 %v534_v46, %v489_v54  ;;  %v537_v22 = vmul.f32 %v2923_v25, %v513_v58  ;;  %728 = vadd.xlane.f32.xlu0 %v702_v63  ;;  %v602_v30 = vmul.f32 %v2926_v27, %v578_v59  ;;  %v450_v15 = vld [vmem:[#allocation4 + $0x2e8] sm:$0xff]  ;;  %v254_v58 = vld [vmem:[#allocation4 + $0x100] sm:$0xff]  ;;  %v642_v63 = vld [vmem:[#allocation4 + $0x4b0] sm:$0xff] }
  0x77   : > { %v427_v26 = vadd.f32 %v407_v43, %v362_v0  ;;  %v296_v33 = vadd.f32 %v276_v47, %v211_v61  ;;  %v406_v34 = vmul.f32 %v2917_v21, %v382_v62  ;;  %v471_v40 = vmul.f32 %v2920_v23, %v447_v12  ;;  %v189_v43 = vld [vmem:[#allocation4 + $0x60] sm:$0xff] }
  0x78   : > { %v705_v35 = vmul.f32 0.1, %v3047_v2  ;;  %v619_v14 = vadd.f32 %v599_v52, %v554_v18  ;;  %v214_v39 = vmul.f32 %v2908_v16, %v190_v13  ;;  %v279_v51 = vmul.f32 %v2911_v17, %v255_v60  ;;  %v319_v61 = vld [vmem:[#allocation4 + $0x1a0] sm:$0xff] }
  0x79   : > { %v492_v46 = vadd.f32 %v472_v56, %v427_v26  ;;  %v361_v50 = vadd.f32 %v341_v57, %v296_v33  ;;  %v344_v38 = vmul.f32 %v2914_v19, %v320_v48  ;;  %v667_v54 = vmul.f32 %v2929_v29, %v643_v31  ;;  %v515_v57 = vld [vmem:[#allocation4 + $0x388] sm:$0xff]  ;;  %v384_v12 = vld [vmem:[#allocation4 + $0x240] sm:$0xff] }
  0x7a   : > { %734 = vadd.xlane.f32.xlu1 %v705_v35  ;;  %v3058_v53 = vadd.f32 %v664_v1, %v619_v14  ;;  %v536_v52 = vmul.f32 %v2923_v25, %v512_v32  ;;  %v601_v59 = vmul.f32 %v2926_v27, %v577_v28  ;;  %v299_v0 = vadd.f32 %v279_v51, %v214_v39  ;;  %v580_v1 = vld [vmem:[#allocation4 + $0x428] sm:$0xff]  ;;  %v192_v32 = vld [vmem:[#allocation4 + $0x78] sm:$0xff] }
  0x7b   : > { %v557_v62 = vadd.f32 %v537_v22, %v492_v46  ;;  %v426_v56 = vadd.f32 %v406_v34, %v361_v50  ;;  %v409_v47 = vmul.f32 %v2917_v21, %v385_v45  ;;  %v474_v18 = vmul.f32 %v2920_v23, %v450_v15  ;;  %v449_v34 = vld [vmem:[#allocation4 + $0x2e0] sm:$0xff]  ;;  %v257_v28 = vld [vmem:[#allocation4 + $0x118] sm:$0xff] }
  0x7c   : > { %v704_v13 = vmul.f32 0.1, %v3058_v53  ;;  %v213_v60 = vmul.f32 %v2908_v16, %v189_v43  ;;  %v278_v48 = vmul.f32 %v2911_v17, %v254_v58  ;;  %v364_v33 = vadd.f32 %v344_v38, %v299_v0  ;;  %v322_v46 = vld [vmem:[#allocation4 + $0x1b8] sm:$0xff]  ;;  %v514_v38 = vld [vmem:[#allocation4 + $0x380] sm:$0xff]  ;;  %v645_v43 = vld [vmem:[#allocation4 + $0x4c8] sm:$0xff] }
  0x7d   : > { %v622_v26 = vadd.f32 %v602_v30, %v557_v62  ;;  %v491_v31 = vadd.f32 %v471_v40, %v426_v56  ;;  %v343_v22 = vmul.f32 %v2914_v19, %v319_v61  ;;  %v666_v35 = vmul.f32 %v2929_v29, %v642_v63  ;;  %v387_v15 = vld [vmem:[#allocation4 + $0x258] sm:$0xff]  ;;  %v579_v62 = vld [vmem:[#allocation4 + $0x420] sm:$0xff] }
  0x7e   : > { %732 = vadd.xlane.f32.xlu0 %v704_v13  ;;  %v539_v14 = vmul.f32 %v2923_v25, %v515_v57  ;;  %v298_v39 = vadd.f32 %v278_v48, %v213_v60  ;;  %v408_v45 = vmul.f32 %v2917_v21, %v384_v12  ;;  %v429_v30 = vadd.f32 %v409_v47, %v364_v33  ;;  %v452_v47 = vld [vmem:[#allocation4 + $0x2f8] sm:$0xff]  ;;  %v191_v12 = vld [vmem:[#allocation4 + $0x70] sm:$0xff] }
  0x7f   : > { %v3072_v50 = vadd.f32 %v667_v54, %v622_v26  ;;  %v556_v51 = vadd.f32 %v536_v52, %v491_v31  ;;  %v604_v40 = vmul.f32 %v2926_v27, %v580_v1  ;;  %v473_v61 = vmul.f32 %v2920_v23, %v449_v34  ;;  %v256_v26 = vld [vmem:[#allocation4 + $0x110] sm:$0xff] }
  0x80   : > { %v363_v58 = vadd.f32 %v343_v22, %v298_v39  ;;  %v216_v56 = vmul.f32 %v2908_v16, %v192_v32  ;;  %v281_v63 = vmul.f32 %v2911_v17, %v257_v28  ;;  %v494_v54 = vadd.f32 %v474_v18, %v429_v30  ;;  %v321_v31 = vld [vmem:[#allocation4 + $0x1b0] sm:$0xff]  ;;  %v644_v18 = vld [vmem:[#allocation4 + $0x4c0] sm:$0xff]  ;;  %v517_v32 = vld [vmem:[#allocation4 + $0x398] sm:$0xff] }
  0x81   : > { %v707_v0 = vmul.f32 0.1, %v3072_v50  ;;  %v621_v57 = vadd.f32 %v601_v59, %v556_v51  ;;  %v346_v52 = vmul.f32 %v2914_v19, %v322_v46  ;;  %v538_v1 = vmul.f32 %v2923_v25, %v514_v38  ;;  %v582_v46 = vld [vmem:[#allocation4 + $0x438] sm:$0xff]  ;;  %v386_v30 = vld [vmem:[#allocation4 + $0x250] sm:$0xff] }
  0x82   : > { %v428_v13 = vadd.f32 %v408_v45, %v363_v58  ;;  %v301_v60 = vadd.f32 %v281_v63, %v216_v56  ;;  %v411_v48 = vmul.f32 %v2917_v21, %v387_v15  ;;  %v559_v22 = vadd.f32 %v539_v14, %v494_v54  ;;  %v194_v58 = vld [vmem:[#allocation4 + $0x88] sm:$0xff] }
  0x83   : > { %738 = vadd.xlane.f32.xlu1 %v707_v0  ;;  %v3082_v33 = vadd.f32 %v666_v35, %v621_v57  ;;  %v669_v34 = vmul.f32 %v2929_v29, %v645_v43  ;;  %v603_v59 = vmul.f32 %v2926_v27, %v579_v62  ;;  %v476_v45 = vmul.f32 %v2920_v23, %v452_v47  ;;  %v451_v43 = vld [vmem:[#allocation4 + $0x2f0] sm:$0xff]  ;;  %v259_v0 = vld [vmem:[#allocation4 + $0x128] sm:$0xff] }
  0x84   : > { %v493_v28 = vadd.f32 %v473_v61, %v428_v13  ;;  %v366_v39 = vadd.f32 %v346_v52, %v301_v60  ;;  %v215_v51 = vmul.f32 %v2908_v16, %v191_v12  ;;  %v624_v15 = vadd.f32 %v604_v40, %v559_v22  ;;  %v324_v57 = vld [vmem:[#allocation4 + $0x1c8] sm:$0xff]  ;;  %v647_v40 = vld [vmem:[#allocation4 + $0x4d8] sm:$0xff]  ;;  %v516_v13 = vld [vmem:[#allocation4 + $0x390] sm:$0xff] }
  0x85   : > { %v706_v38 = vmul.f32 0.1, %v3082_v33  ;;  %v280_v35 = vmul.f32 %v2911_v17, %v256_v26  ;;  %v345_v14 = vmul.f32 %v2914_v19, %v321_v31  ;;  %v668_v56 = vmul.f32 %v2929_v29, %v644_v18  ;;  %v581_v31 = vld [vmem:[#allocation4 + $0x430] sm:$0xff]  ;;  %v389_v22 = vld [vmem:[#allocation4 + $0x268] sm:$0xff] }
  0x86   : > { %v558_v62 = vadd.f32 %v538_v1, %v493_v28  ;;  %v431_v61 = vadd.f32 %v411_v48, %v366_v39  ;;  %v541_v63 = vmul.f32 %v2923_v25, %v517_v32  ;;  %v3093_v54 = vadd.f32 %v669_v34, %v624_v15  ;;  %v454_v39 = vld [vmem:[#allocation4 + $0x308] sm:$0xff]  ;;  %v323_v15 = vld [vmem:[#allocation4 + $0x1c0] sm:$0xff] }
  0x87   : > { %736 = vadd.xlane.f32.xlu0 %v706_v38  ;;  %v606_v52 = vmul.f32 %v2926_v27, %v582_v46  ;;  %v300_v47 = vadd.f32 %v280_v35, %v215_v51  ;;  %v410_v12 = vmul.f32 %v2917_v21, %v386_v30  ;;  %v475_v1 = vmul.f32 %v2920_v23, %v451_v43  ;;  %v193_v46 = vld [vmem:[#allocation4 + $0x80] sm:$0xff] }
  0x88   : > { %3650 = vst [vmem:[#allocation13_spill] sm:$0xff] %v3093_v54  ;;  %v623_v60 = vadd.f32 %v603_v59, %v558_v62  ;;  %v496_v26 = vadd.f32 %v476_v45, %v431_v61  ;;  %v218_v48 = vmul.f32 %v2908_v16, %v194_v58  ;;  %v709_v18 = vmul.f32 0.1, %v3093_v54  ;;  %v258_v38 = vld [vmem:[#allocation4 + $0x120] sm:$0xff]  ;;  %v519_v61 = vld [vmem:[#allocation4 + $0x3a8] sm:$0xff] }
  0x89   : > { %v365_v32 = vadd.f32 %v345_v14, %v300_v47  ;;  %v283_v34 = vmul.f32 %v2911_v17, %v259_v0  ;;  %v348_v28 = vmul.f32 %v2914_v19, %v324_v57  ;;  %v671_v59 = vmul.f32 %v2929_v29, %v647_v40  ;;  %v646_v14 = vld [vmem:[#allocation4 + $0x4d0] sm:$0xff]  ;;  %v584_v0 = vld [vmem:[#allocation4 + $0x448] sm:$0xff]  ;;  %v388_v47 = vld [vmem:[#allocation4 + $0x260] sm:$0xff] }
  0x8a   : > { %v3102_v51 = vadd.f32 %v668_v56, %v623_v60  ;;  %v561_v30 = vadd.f32 %v541_v63, %v496_v26  ;;  %v540_v45 = vmul.f32 %v2923_v25, %v516_v13  ;;  %742 = vadd.xlane.f32.xlu1 %v709_v18  ;;  %v605_v43 = vmul.f32 %v2926_v27, %v581_v31  ;;  %v453_v31 = vld [vmem:[#allocation4 + $0x300] sm:$0xff]  ;;  %v261_v18 = vld [vmem:[#allocation4 + $0x138] sm:$0xff] }
  0x8b   : > { %v430_v35 = vadd.f32 %v410_v12, %v365_v32  ;;  %v303_v58 = vadd.f32 %v283_v34, %v218_v48  ;;  %v413_v62 = vmul.f32 %v2917_v21, %v389_v22  ;;  %v478_v63 = vmul.f32 %v2920_v23, %v454_v39  ;;  %v196_v48 = vld [vmem:[#allocation4 + $0x98] sm:$0xff] }
  0x8c   : > { %v708_v56 = vmul.f32 0.1, %v3102_v51  ;;  %v626_v57 = vadd.f32 %v606_v52, %v561_v30  ;;  %v217_v40 = vmul.f32 %v2908_v16, %v193_v46  ;;  %v282_v12 = vmul.f32 %v2911_v17, %v258_v38  ;;  %v326_v39 = vld [vmem:[#allocation4 + $0x1d8] sm:$0xff] }
  0x8d   : > { %v495_v13 = vadd.f32 %v475_v1, %v430_v35  ;;  %v368_v60 = vadd.f32 %v348_v28, %v303_v58  ;;  %v347_v26 = vmul.f32 %v2914_v19, %v323_v15  ;;  %v670_v32 = vmul.f32 %v2929_v29, %v646_v14  ;;  %v649_v28 = vld [vmem:[#allocation4 + $0x4e8] sm:$0xff]  ;;  %v518_v15 = vld [vmem:[#allocation4 + $0x3a0] sm:$0xff]  ;;  %v391_v35 = vld [vmem:[#allocation4 + $0x278] sm:$0xff] }
  0x8e   : > { %740 = vadd.xlane.f32.xlu0 %v708_v56  ;;  %v3113_v22 = vadd.f32 %v671_v59, %v626_v57  ;;  %v543_v52 = vmul.f32 %v2923_v25, %v519_v61  ;;  %v608_v34 = vmul.f32 %v2926_v27, %v584_v0  ;;  %v302_v30 = vadd.f32 %v282_v12, %v217_v40  ;;  %v583_v56 = vld [vmem:[#allocation4 + $0x440] sm:$0xff]  ;;  %v195_v40 = vld [vmem:[#allocation4 + $0x90] sm:$0xff] }
  0x8f   : > { %v560_v46 = vadd.f32 %v540_v45, %v495_v13  ;;  %v433_v1 = vadd.f32 %v413_v62, %v368_v60  ;;  %v412_v38 = vmul.f32 %v2917_v21, %v388_v47  ;;  %v477_v59 = vmul.f32 %v2920_v23, %v453_v31  ;;  %v456_v62 = vld [vmem:[#allocation4 + $0x318] sm:$0xff]  ;;  %v260_v13 = vld [vmem:[#allocation4 + $0x130] sm:$0xff] }
  0x90   : > { %3651 = vst [vmem:[#allocation14_spill] sm:$0xff] %v3113_v22  ;;  %v711_v58 = vmul.f32 0.1, %v3113_v22  ;;  %v220_v14 = vmul.f32 %v2908_v16, %v196_v48  ;;  %v285_v61 = vmul.f32 %v2911_v17, %v261_v18  ;;  %v367_v54 = vadd.f32 %v347_v26, %v302_v30  ;;  %v325_v22 = vld [vmem:[#allocation4 + $0x1d0] sm:$0xff]  ;;  %v521_v26 = vld [vmem:[#allocation4 + $0x3b8] sm:$0xff] }
  0x91   : > { %v625_v57 = vadd.f32 %v605_v43, %v560_v46  ;;  %v498_v0 = vadd.f32 %v478_v63, %v433_v1  ;;  %v350_v45 = vmul.f32 %v2914_v19, %v326_v39  ;;  %v673_v47 = vmul.f32 %v2929_v29, %v649_v28  ;;  %v390_v39 = vld [vmem:[#allocation4 + $0x270] sm:$0xff]  ;;  %v648_v46 = vld [vmem:[#allocation4 + $0x4e0] sm:$0xff] }
  0x92   : > { %746 = vadd.xlane.f32.xlu1 %v711_v58  ;;  %v542_v60 = vmul.f32 %v2923_v25, %v518_v15  ;;  %v305_v12 = vadd.f32 %v285_v61, %v220_v14  ;;  %v415_v31 = vmul.f32 %v2917_v21, %v391_v35  ;;  %v432_v43 = vadd.f32 %v412_v38, %v367_v54  ;;  %v455_v54 = vld [vmem:[#allocation4 + $0x310] sm:$0xff] }
  0x93   : > { %v3127_v48 = vadd.f32 %v670_v32, %v625_v57  ;;  %v563_v18 = vadd.f32 %v543_v52, %v498_v0  ;;  %v607_v63 = vmul.f32 %v2926_v27, %v583_v56  ;;  %v480_v30 = vmul.f32 %v2920_v23, %v456_v62  ;;  %v586_v32 = vld [vmem:[#allocation4 + $0x458] sm:$0xff]  ;;  %v520_v62 = vld [vmem:[#allocation4 + $0x3b0] sm:$0xff] }
  0x94   : > { %v370_v1 = vadd.f32 %v350_v45, %v305_v12  ;;  %v219_v28 = vmul.f32 %v2908_v16, %v195_v40  ;;  %v284_v15 = vmul.f32 %v2911_v17, %v260_v13  ;;  %v497_v14 = vadd.f32 %v477_v59, %v432_v43  ;;  %v651_v45 = vld [vmem:[#allocation4 + $0x4f8] sm:$0xff]  ;;  %v585_v12 = vld [vmem:[#allocation4 + $0x450] sm:$0xff] }
  0x95   : > { %v710_v58 = vmul.f32 0.1, %v3127_v48  ;;  %v628_v35 = vadd.f32 %v608_v34, %v563_v18  ;;  %v349_v52 = vmul.f32 %v2914_v19, %v325_v22  ;;  %v545_v56 = vmul.f32 %v2923_v25, %v521_v26  ;;  %v650_v43 = vld [vmem:[#allocation4 + $0x4f0] sm:$0xff] }
  0x96   : > { %v435_v38 = vadd.f32 %v415_v31, %v370_v1  ;;  %v304_v61 = vadd.f32 %v284_v15, %v219_v28  ;;  %v414_v57 = vmul.f32 %v2917_v21, %v390_v39  ;;  %v562_v16 = vadd.f32 %v542_v60, %v497_v14 }
  0x97   : > { %744 = vadd.xlane.f32.xlu0 %v710_v58  ;;  %v3137_v0 = vadd.f32 %v673_v47, %v628_v35  ;;  %v672_v17 = vmul.f32 %v2929_v29, %v648_v46  ;;  %v610_v59 = vmul.f32 %v2926_v27, %v586_v32  ;;  %v479_v19 = vmul.f32 %v2920_v23, %v455_v54 }
  0x98   : > { %v500_v34 = vadd.f32 %v480_v30, %v435_v38  ;;  %v369_v40 = vadd.f32 %v349_v52, %v304_v61  ;;  %v627_v13 = vadd.f32 %v607_v63, %v562_v16  ;;  %v675_v21 = vmul.f32 %v2929_v29, %v651_v45 }
  0x99   : > { %v713_v22 = vmul.f32 0.1, %v3137_v0  ;;  %v544_v60 = vmul.f32 %v2923_v25, %v520_v62  ;;  %v609_v46 = vmul.f32 %v2926_v27, %v585_v12  ;;  %v674_v30 = vmul.f32 %v2929_v29, %v650_v43 }
  0x9a   : > { %v565_v31 = vadd.f32 %v545_v56, %v500_v34  ;;  %v434_v47 = vadd.f32 %v414_v57, %v369_v40  ;;  %v3145_v18 = vadd.f32 %v672_v17, %v627_v13  ;;  %vm1340_vm14 = vcmask 1041408  }
  0x9b   : > { %750 = vadd.xlane.f32.xlu1 %v713_v22 }
  0x9c   : > { %3652 = vst [vmem:[#allocation15_spill] sm:$0xff] %v3145_v18  ;;  %v630_v26 = vadd.f32 %v610_v59, %v565_v31  ;;  %v499_v39 = vadd.f32 %v479_v19, %v434_v47  ;;  %v712_v23 = vmul.f32 0.1, %v3145_v18 }
  0x9e   : > { %v3149_v1 = vadd.f32 %v675_v21, %v630_v26  ;;  %v564_v63 = vadd.f32 %v544_v60, %v499_v39  ;;  %748 = vadd.xlane.f32.xlu0 %v712_v23 }
  0xa0   : > { %v715_v28 = vmul.f32 0.1, %v3149_v1  ;;  %v629_v15 = vadd.f32 %v609_v46, %v564_v63 }
  0xa2   : > { %754 = vadd.xlane.f32.xlu1 %v715_v28  ;;  %v3153_v25 = vadd.f32 %v674_v30, %v629_v15 }
  0xa4   : > { %3653 = vst [vmem:[#allocation16_spill] sm:$0xff] %v3153_v25  ;;  %v714_v58 = vmul.f32 0.1, %v3153_v25 }
  0xa6   : > { %752 = vadd.xlane.f32.xlu0 %v714_v58 }
  0xe8   : > { %v721_v35 = vpop.xlane.xlu1 %720 }
  0xe9   : > { %v717_v14 = vpop.xlane.xlu0 %716  ;;  %v973_v40 = vrot.slane %v721_v35, %v2905_v11  ;;  %v758_v30 = vmul.f32 %v721_v35, %v721_v35 }
  0xea   : > { %v964_v19 = vrot.slane %v717_v14, %v2905_v11 }
  0xec   : > { %v723_v27 = vpop.xlane.xlu1 %722 }
  0xed   : > { %v977_v17 = vrot.slane %v723_v27, %v2936_v41  ;;  %v759_v28 = vmul.f32 %v723_v27, %v723_v27 }
  0xef   : > { %v719_v32 = vpop.xlane.xlu0 %718  ;;  %v978_v31 = vsel %vm807_vm0, %v977_v17, %v973_v40 }
  0xf0   : > { %v968_v45 = vrot.slane %v719_v32, %v2936_v41 }
  0xf2   : > { %v727_v52 = vpop.xlane.xlu1 %726  ;;  %v969_v21 = vsel %vm807_vm0, %v968_v45, %v964_v19  ;;  %v812_v19 = vrot.slane %v758_v30, %v2905_v11 }
  0xf3   : > { %v986_v62 = vrot.slane %v727_v52, %v2936_v41  ;;  %v1051_v26 = vsel %vm890_vm1, %v978_v31, %v969_v21  ;;  %v761_v45 = vmul.f32 %v727_v52, %v727_v52 }
  0xf5   : > { %v825_v52 = vrot.slane %v761_v45, %v2936_v41 }
  0xf8   : > { %v725_v54 = vpop.xlane.xlu0 %724 }
  0xf9   : > { %v982_v34 = vrot.slane %v725_v54, %v2905_v11 }
  0xfb   : > { %v987_v47 = vsel %vm807_vm0, %v986_v62, %v982_v34  ;;  %v760_v62 = vmul.f32 %v725_v54, %v725_v54  ;;  %v756_v34 = vmul.f32 %v717_v14, %v717_v14 }
  0xfc   : > { %v731_v38 = vpop.xlane.xlu1 %730  ;;  %v1052_v46 = vsel %vm892_vm2, %v987_v47, %v1051_v26 }
  0xfd   : > { %v995_v22 = vrot.slane %v731_v38, %v2936_v41  ;;  %v763_v35 = vmul.f32 %v731_v38, %v731_v38  ;;  %v821_v14 = vrot.slane %v760_v62, %v2905_v11 }
  0xff   : > { %v729_v56 = vpop.xlane.xlu0 %728  ;;  %v826_v30 = vsel %vm807_vm0, %v825_v52, %v821_v14 }
 0x100   : > { %v991_v13 = vrot.slane %v729_v56, %v2905_v11  ;;  %v762_v27 = vmul.f32 %v729_v56, %v729_v56  ;;  %v834_v56 = vrot.slane %v763_v35, %v2936_v41 }
 0x102   : > { %v996_v60 = vsel %vm807_vm0, %v995_v22, %v991_v13  ;;  %v816_v22 = vrot.slane %v759_v28, %v2936_v41 }
 0x103   : > { %v735_v61 = vpop.xlane.xlu1 %734  ;;  %v1053_v63 = vsel %vm894_vm3, %v996_v60, %v1052_v46  ;;  %v801_v60 = vrot.slane %v756_v34, %v2905_v11  ;;  %v830_v46 = vrot.slane %v762_v27, %v2905_v11 }
 0x104   : > { %v1004_v29 = vrot.slane %v735_v61, %v2936_v41  ;;  %v765_v31 = vmul.f32 %v735_v61, %v735_v61 }
 0x105   : > { %v835_v45 = vsel %vm807_vm0, %v834_v56, %v830_v46 }
 0x107   : > { %v733_v57 = vpop.xlane.xlu0 %732 }
 0x108   : > { %v1000_v16 = vrot.slane %v733_v57, %v2905_v11 }
 0x10a   : > { %v1005_v59 = vsel %vm807_vm0, %v1004_v29, %v1000_v16  ;;  %v757_v29 = vmul.f32 %v719_v32, %v719_v32  ;;  %v764_v32 = vmul.f32 %v733_v57, %v733_v57 }
 0x10b   : > { %v1054_v15 = vsel %vm896_vm4, %v1005_v59, %v1053_v63 }
 0x10c   : > { %v739_v12 = vpop.xlane.xlu1 %738  ;;  %v806_v59 = vrot.slane %v757_v29, %v2936_v41 }
 0x10d   : > { %v1013_v43 = vrot.slane %v739_v12, %v2936_v41  ;;  %v767_v54 = vmul.f32 %v739_v12, %v739_v12  ;;  %v843_v12 = vrot.slane %v765_v31, %v2936_v41 }
 0x10e   : > { %v808_v63 = vsel %vm807_vm0, %v806_v59, %v801_v60 }
 0x10f   : > { %v852_v28 = vrot.slane %v767_v54, %v2936_v41 }
 0x110   : > { %v737_v39 = vpop.xlane.xlu0 %736 }
 0x111   : > { %v1009_v23 = vrot.slane %v737_v39, %v2905_v11  ;;  %v766_v47 = vmul.f32 %v737_v39, %v737_v39  ;;  %v839_v39 = vrot.slane %v764_v32, %v2905_v11 }
 0x113   : > { %v1014_v58 = vsel %vm807_vm0, %v1013_v43, %v1009_v23  ;;  %v743_v17 = vpop.xlane.xlu1 %742  ;;  %v817_v23 = vsel %vm807_vm0, %v816_v22, %v812_v19 }
 0x114   : > { %v1055_v16 = vsel %vm898_vm5, %v1014_v58, %v1054_v15  ;;  %v1022_v40 = vrot.slane %v743_v17, %v2936_v41  ;;  %v769_v43 = vmul.f32 %v743_v17, %v743_v17  ;;  %v848_v15 = vrot.slane %v766_v47, %v2905_v11 }
 0x115   : > { %v891_v17 = vsel %vm890_vm1, %v817_v23, %v808_v63 }
 0x116   : > { %v861_v29 = vrot.slane %v769_v43, %v2936_v41  ;;  %v893_v34 = vsel %vm892_vm2, %v826_v30, %v891_v17 }
 0x117   : > { %v741_v13 = vpop.xlane.xlu0 %740  ;;  %v895_v31 = vsel %vm894_vm3, %v835_v45, %v893_v34 }
 0x118   : > { %v1018_v21 = vrot.slane %v741_v13, %v2905_v11  ;;  %v768_v26 = vmul.f32 %v741_v13, %v741_v13  ;;  %v853_v13 = vsel %vm807_vm0, %v852_v28, %v848_v15 }
 0x11a   : > { %v1023_v38 = vsel %vm807_vm0, %v1022_v40, %v1018_v21  ;;  %v844_v40 = vsel %vm807_vm0, %v843_v12, %v839_v39 }
 0x11b   : > { %v1056_v61 = vsel %vm900_vm6, %v1023_v38, %v1055_v16  ;;  %v747_v57 = vpop.xlane.xlu1 %746  ;;  %v857_v16 = vrot.slane %v768_v26, %v2905_v11  ;;  %v897_v52 = vsel %vm896_vm4, %v844_v40, %v895_v31 }
 0x11c   : > { %v771_v58 = vmul.f32 %v747_v57, %v747_v57  ;;  %v1031_v62 = vrot.slane %v747_v57, %v2936_v41  ;;  %v899_v47 = vsel %vm898_vm5, %v853_v13, %v897_v52 }
 0x11d   : > { %v862_v59 = vsel %vm807_vm0, %v861_v29, %v857_v16 }
 0x11e   : > { %v870_v22 = vrot.slane %v771_v58, %v2936_v41  ;;  %v901_v43 = vsel %vm900_vm6, %v862_v59, %v899_v47 }
 0x120   : > { %v745_v19 = vpop.xlane.xlu0 %744 }
 0x121   : > { %v770_v35 = vmul.f32 %v745_v19, %v745_v19  ;;  %v1027_v27 = vrot.slane %v745_v19, %v2905_v11 }
 0x123   : > { %v866_v32 = vrot.slane %v770_v35, %v2905_v11  ;;  %v1032_v21 = vsel %vm807_vm0, %v1031_v62, %v1027_v27 }
 0x124   : > { %v3214_v14 = vsel %vm902_vm7, %v1032_v21, %v1056_v61  ;;  %v751_v54 = vpop.xlane.xlu1 %750 }
 0x125   : > { %v871_v60 = vsel %vm807_vm0, %v870_v22, %v866_v32  ;;  %v1040_v38 = vrot.slane %v751_v54, %v2936_v41  ;;  %v773_v63 = vmul.f32 %v751_v54, %v751_v54 }
 0x126   : > { %v903_v26 = vsel %vm902_vm7, %v871_v60, %v901_v43 }
 0x127   : > { %v908_v56 = vsel %vm907_vm8, %v903_v26, 0.0  ;;  %v749_v46 = vpop.xlane.xlu0 %748  ;;  %v879_v28 = vrot.slane %v773_v63, %v2936_v41 }
 0x128   : > { %909 = vadd.xlane.f32.xlu0 %v908_v56  ;;  %v1036_v57 = vrot.slane %v749_v46, %v2905_v11  ;;  %v772_v12 = vmul.f32 %v749_v46, %v749_v46 }
 0x12a   : > { %v1041_v61 = vsel %vm807_vm0, %v1040_v38, %v1036_v57  ;;  %v875_v15 = vrot.slane %v772_v12, %v2905_v11 }
 0x12b   : > { %v755_v23 = vpop.xlane.xlu1 %754 }
 0x12c   : > { %v775_v39 = vmul.f32 %v755_v23, %v755_v23  ;;  %v880_v17 = vsel %vm807_vm0, %v879_v28, %v875_v15  ;;  %v1049_v56 = vrot.slane %v755_v23, %v2936_v41 }
 0x12e   : > { %v888_v58 = vrot.slane %v775_v39, %v2936_v41 }
 0x12f   : > { %v753_v30 = vpop.xlane.xlu0 %752 }
 0x130   : > { %v774_v29 = vmul.f32 %v753_v30, %v753_v30  ;;  %v1045_v46 = vrot.slane %v753_v30, %v2905_v11 }
 0x132   : > { %v884_v16 = vrot.slane %v774_v29, %v2905_v11  ;;  %v1050_v12 = vsel %vm807_vm0, %v1049_v56, %v1045_v46 }
 0x134   : > { %v889_v45 = vsel %vm807_vm0, %v888_v58, %v884_v16  ;;  %v1058_v16 = vsel %vm890_vm1, %v1050_v12, %v1041_v61 }
 0x135   : > { %v904_v62 = vsel %vm890_vm1, %v889_v45, %v880_v17 }
 0x136   : > { %v912_v34 = vsel %vm911_vm9, %v904_v62, 0.0 }
 0x137   : > { %913 = vadd.xlane.f32.xlu1 %v912_v34 }
 0x1b1   : > { %v910_v40 = vpop.xlane.xlu0 %909 }
 0x1b2   : > { %2597 = vrsqrt.f32 %v910_v40  ;;  %vm917_vm10 = vcmp.eq.f32.partialorder %v910_v40, inf  ;;  %v920_v13 = vand.u32 2147483648, %v910_v40  ;;  %vm919_vm11 = vcmp.eq.f32.partialorder %v910_v40, 0.0 }
 0x1b3   : > { %v929_v31 = vadd.f32 1.0, %v910_v40 }
 0x1bf   : > { %v2598_v22 = vpop.eup %2597 }
 0x1c0   : > { %v914_v19 = vpop.xlane.xlu1 %913  ;;  %v916_v35 = vmul.f32 %v2598_v22, %v910_v40 }
 0x1c1   : > { %2599 = vrsqrt.f32 %v914_v19  ;;  %v930_v32 = vadd.f32 1.0, %v914_v19  ;;  %vm924_vm12 = vcmp.eq.f32.partialorder %v914_v19, inf  ;;  %v927_v47 = vand.u32 2147483648, %v914_v19 }
 0x1c2   : > { %v918_v27 = vsel %vm917_vm10, %v910_v40, %v916_v35  ;;  %2601 = vrcp.f32 %v929_v31  ;;  %vm926_vm13 = vcmp.eq.f32.partialorder %v914_v19, 0.0 }
 0x1c3   : > { %v921_v59 = vsel %vm919_vm11, %v920_v13, %v918_v27  ;;  %2603 = vrcp.f32 %v930_v32 }
 0x1c4   : > { %v935_v52 = vadd.f32 1e-08, %v921_v59 }
 0x1c6   : > { %2605 = vrcp.f32 %v935_v52 }
 0x1ce   : > { %v2600_v21 = vpop.eup %2599 }
 0x1cf   : > { %v923_v54 = vmul.f32 %v2600_v21, %v914_v19  ;;  %v2602_v38 = vpop.eup %2601 }
 0x1d0   : > { %v2604_v57 = vpop.eup %2603  ;;  %v932_v39 = vmul.f32 %v2602_v38, %v910_v40 }
 0x1d1   : > { %v925_v60 = vsel %vm924_vm12, %v914_v19, %v923_v54  ;;  %v934_v28 = vmul.f32 %v2604_v57, %v914_v19 }
 0x1d2   : > { %v928_v43 = vsel %vm926_vm13, %v927_v47, %v925_v60 }
 0x1d3   : > { %v936_v26 = vadd.f32 1e-08, %v928_v43  ;;  %v2606_v63 = vpop.eup %2605 }
 0x1d4   : > { %v938_v58 = vmul.f32 %v2606_v63, %v932_v39 }
 0x1d5   : > { %2607 = vrcp.f32 %v936_v26 }
 0x1d6   : > { %v1061_v45 = vmul.f32 %v3214_v14, %v938_v58 }
 0x1d8   : > { %v1066_v23 = vrot.slane %v1061_v45, %v2889_v3  ;;  %v1077_v30 = vrot.slane %v1061_v45, %v2891_v4  ;;  %v1110_v34 = vrot.slane %v1061_v45, %v2897_v7  ;;  %v1121_v40 = vrot.slane %v1061_v45, %v2899_v8 }
 0x1d9   : > { %v1088_v14 = vrot.slane %v1061_v45, %v2893_v5  ;;  %v1099_v61 = vrot.slane %v1061_v45, %v2895_v6  ;;  %v1132_v19 = vrot.slane %v1061_v45, %v2901_v9  ;;  %v1143_v22 = vrot.slane %v1061_v45, %v2903_v10 }
 0x1e2   : > { %v2608_v15 = vpop.eup %2607 }
 0x1e3   : > { %v940_v29 = vmul.f32 %v2608_v15, %v934_v28 }
 0x1e5   : > { %v1062_v17 = vmul.f32 %v1058_v16, %v940_v29 }
 0x1e7   : > { %v1154_v62 = vrot.slane %v1062_v17, %v2889_v3  ;;  %v1165_v35 = vrot.slane %v1062_v17, %v2891_v4 }
 0x1e9   : > { %1160 = vbcast.lane.b32.xlu1 %v1154_v62, 264  ;;  %1156 = vbcast.lane.b32.xlu0 %v1154_v62, 256 }
 0x1ed   : > { %1072 = vbcast.lane.b32.xlu1 %v1066_v23, 264  ;;  %1068 = vbcast.lane.b32.xlu0 %v1066_v23, 256 }
 0x1f1   : > { %1079 = vbcast.lane.b32.xlu1 %v1077_v30, 256  ;;  %1112 = vbcast.lane.b32.xlu0 %v1110_v34, 256 }
 0x1f5   : > { %1083 = vbcast.lane.b32.xlu1 %v1077_v30, 264  ;;  %1123 = vbcast.lane.b32.xlu0 %v1121_v40, 256 }
 0x1f9   : > { %1116 = vbcast.lane.b32.xlu1 %v1110_v34, 264  ;;  %1090 = vbcast.lane.b32.xlu0 %v1088_v14, 256 }
 0x1fd   : > { %1127 = vbcast.lane.b32.xlu1 %v1121_v40, 264  ;;  %1101 = vbcast.lane.b32.xlu0 %v1099_v61, 256 }
 0x201   : > { %1094 = vbcast.lane.b32.xlu1 %v1088_v14, 264  ;;  %1134 = vbcast.lane.b32.xlu0 %v1132_v19, 256 }
 0x205   : > { %1105 = vbcast.lane.b32.xlu1 %v1099_v61, 264  ;;  %1145 = vbcast.lane.b32.xlu0 %v1143_v22, 256 }
 0x209   : > { %1138 = vbcast.lane.b32.xlu1 %v1132_v19, 264  ;;  %1167 = vbcast.lane.b32.xlu0 %v1165_v35, 256 }
 0x20d   : > { %1149 = vbcast.lane.b32.xlu1 %v1143_v22, 264 }
 0x211   : > { %1171 = vbcast.lane.b32.xlu1 %v1165_v35, 264 }
 0x25b   : > { %v1161_v27 = vpop.permute.xlu1 %1160  ;;  %v1157_v13 = vpop.permute.xlu0 %1156 }
 0x25c   : > { %v1190_v58 = vmul.f32 %v1161_v27, %v3137_v0  ;;  %v1189_v29 = vmul.f32 %v1157_v13, %v3145_v18 }
 0x25e   : > { %v1249_v22 = vadd.f32 %v1190_v58, %v1189_v29  ;;  %v3655_v29 = vld [vmem:[#allocation14_spill] sm:$0xff] }
 0x25f   : > { %v1073_v59 = vpop.permute.xlu1 %1072  ;;  %v1069_v31 = vpop.permute.xlu0 %1068 }
 0x260   : > { %v1174_v56 = vmul.f32 %v1073_v59, %v2992_v24  ;;  %v1173_v46 = vmul.f32 %v1069_v31, %v2976_v36 }
 0x262   : > { %v1193_v16 = vadd.f32 %v1174_v56, %v1173_v46  ;;  %v3654_v56 = vld [vmem:[#allocation13_spill] sm:$0xff] }
 0x263   : > { %v1080_v32 = vpop.permute.xlu1 %1079  ;;  %v1113_v21 = vpop.permute.xlu0 %1112 }
 0x264   : > { %v1181_v57 = vmul.f32 %v1113_v21, %v3058_v53  ;;  %v1175_v17 = vmul.f32 %v1080_v32, %v2970_v20  ;;  %v1194_v35 = vrot.slane %v1193_v16, 4 }
 0x267   : > { %v1084_v52 = vpop.permute.xlu1 %1083  ;;  %v1124_v54 = vpop.permute.xlu0 %1123 }
 0x268   : > { %v1176_v12 = vmul.f32 %v1084_v52, %v2984_v55  ;;  %v1183_v15 = vmul.f32 %v1124_v54, %v3082_v33 }
 0x26a   : > { %v1200_v30 = vadd.f32 %v1176_v12, %v1175_v17 }
 0x26b   : > { %v1117_v47 = vpop.permute.xlu1 %1116  ;;  %v1091_v60 = vpop.permute.xlu0 %1090 }
 0x26c   : > { %v1182_v43 = vmul.f32 %v1117_v47, %v3047_v2  ;;  %v1177_v14 = vmul.f32 %v1091_v60, %v3017_v49  ;;  %v1201_v31 = vrot.slane %v1200_v30, 4  ;;  %v1250_v47 = vrot.slane %v1249_v22, 4 }
 0x26e   : > { %v1221_v39 = vadd.f32 %v1182_v43, %v1181_v57  ;;  %v1195_v43 = vadd.f32 %v1194_v35, %v1193_v16  ;;  %v1202_v57 = vadd.f32 %v1201_v31, %v1200_v30  ;;  %v1251_v17 = vadd.f32 %v1250_v47, %v1249_v22 }
 0x26f   : > { %v1128_v26 = vpop.permute.xlu1 %1127  ;;  %v1102_v38 = vpop.permute.xlu0 %1101 }
 0x270   : > { %v1184_v63 = vmul.f32 %v1128_v26, %v3072_v50  ;;  %v1222_v34 = vrot.slane %v1221_v39, 4  ;;  %v1179_v61 = vmul.f32 %v1102_v38, %v3038_v37 }
 0x272   : > { %v1228_v62 = vadd.f32 %v1184_v63, %v1183_v15  ;;  %v1223_v32 = vadd.f32 %v1222_v34, %v1221_v39 }
 0x273   : > { %v1095_v28 = vpop.permute.xlu1 %1094  ;;  %v1135_v45 = vpop.permute.xlu0 %1134 }
 0x274   : > { %v1178_v23 = vmul.f32 %v1095_v28, %v3001_v42  ;;  %v1229_v27 = vrot.slane %v1228_v62, 4  ;;  %v1185_v26 = vmul.f32 %v1135_v45, %v3102_v51  ;;  %v1224_v63 = vrot.slane %v1223_v32, 2 }
 0x276   : > { %v1207_v13 = vadd.f32 %v1178_v23, %v1177_v14  ;;  %v1230_v46 = vadd.f32 %v1229_v27, %v1228_v62  ;;  %v1196_v23 = vrot.slane %v1195_v43, 2 }
 0x277   : > { %v1106_v40 = vpop.permute.xlu1 %1105  ;;  %v1146_v21 = vpop.permute.xlu0 %1145 }
 0x278   : > { %v1180_v19 = vmul.f32 %v1106_v40, %v3027_v44  ;;  %v1208_v38 = vrot.slane %v1207_v13, 4  ;;  %v1187_v58 = vmul.f32 %v1146_v21, %v3127_v48  ;;  %v1231_v16 = vrot.slane %v1230_v46, 2 }
 0x279   : > { %v1252_v21 = vrot.slane %v1251_v17, 2 }
 0x27a   : > { %v1214_v59 = vadd.f32 %v1180_v19, %v1179_v61  ;;  %v1209_v14 = vadd.f32 %v1208_v38, %v1207_v13  ;;  %v1203_v61 = vrot.slane %v1202_v57, 2  ;;  %v1225_v19 = vadd.f32 %v1224_v63, %v1223_v32 }
 0x27b   : > { %v1139_v52 = vpop.permute.xlu1 %1138  ;;  %v1168_v40 = vpop.permute.xlu0 %1167  ;;  %v1232_v22 = vadd.f32 %v1231_v16, %v1230_v46 }
 0x27c   : > { %v1215_v54 = vrot.slane %v1214_v59, 4  ;;  %v1186_v60 = vmul.f32 %v1139_v52, %v3654_v56  ;;  %v1191_v27 = vmul.f32 %v1168_v40, %v3153_v25  ;;  %v1197_v52 = vadd.f32 %v1196_v23, %v1195_v43 }
 0x27d   : > { %v1210_v47 = vrot.slane %v1209_v14, 2  ;;  %v1226_v13 = vrot.slane %v1225_v19, 1 }
 0x27e   : > { %v1235_v12 = vadd.f32 %v1186_v60, %v1185_v26  ;;  %v1216_v15 = vadd.f32 %v1215_v54, %v1214_v59 }
 0x27f   : > { %v1150_v28 = vpop.permute.xlu1 %1149  ;;  %v1211_v40 = vadd.f32 %v1210_v47, %v1209_v14  ;;  %v3267_v6 = vadd.f32 %v1226_v13, %v1225_v19 }
 0x280   : > { %v1188_v39 = vmul.f32 %v1150_v28, %v3655_v29  ;;  %v1236_v34 = vrot.slane %v1235_v12, 4  ;;  %v1217_v30 = vrot.slane %v1216_v15, 2  ;;  %v1204_v28 = vadd.f32 %v1203_v61, %v1202_v57 }
 0x281   : > { %v1212_v61 = vrot.slane %v1211_v40, 1 }
 0x282   : > { %v1242_v45 = vadd.f32 %v1188_v39, %v1187_v58  ;;  %v1237_v62 = vadd.f32 %v1236_v34, %v1235_v12  ;;  %v1218_v38 = vadd.f32 %v1217_v30, %v1216_v15  ;;  %v1253_v12 = vadd.f32 %v1252_v21, %v1251_v17 }
 0x283   : > { %v1172_v35 = vpop.permute.xlu1 %1171  ;;  %v1198_v39 = vrot.slane %v1197_v52, 1  ;;  %v1233_v34 = vrot.slane %v1232_v22, 1 }
 0x284   : > { %v1243_v31 = vrot.slane %v1242_v45, 4  ;;  %v1192_v59 = vmul.f32 %v1172_v35, %v3149_v1  ;;  %v1238_v54 = vrot.slane %v1237_v62, 2  ;;  %v1205_v35 = vrot.slane %v1204_v28, 1 }
 0x285   : > { %v1219_v43 = vrot.slane %v1218_v38, 1  ;;  %v3269_v57 = vadd.f32 %v1198_v39, %v1197_v52  ;;  %v3271_v15 = vadd.f32 %v1233_v34, %v1232_v22  ;;  %v3287_v52 = vadd.f32 %v1212_v61, %v1211_v40 }
 0x286   : > { %v1244_v26 = vadd.f32 %v1243_v31, %v1242_v45  ;;  %v1256_v60 = vadd.f32 %v1192_v59, %v1191_v27  ;;  %v1239_v58 = vadd.f32 %v1238_v54, %v1237_v62  ;;  %v1254_v45 = vrot.slane %v1253_v12, 1 }
 0x287   : > { %v3275_v30 = vadd.f32 %v1205_v35, %v1204_v28  ;;  %v1273_v14 = vmax.f32 %v3269_v57, %v3267_v6  ;;  %v3279_v19 = vadd.f32 %v1219_v43, %v1218_v38  ;;  %3656 = vst [vmem:[#allocation13_spill] sm:$0xff] %v3287_v52 }
 0x288   : > { %v1245_v32 = vrot.slane %v1244_v26, 2  ;;  %v1257_v63 = vrot.slane %v1256_v60, 4  ;;  %v1240_v46 = vrot.slane %v1239_v58, 1  ;;  %v3283_v59 = vadd.f32 %v1254_v45, %v1253_v12 }
 0x289   : > { %v1274_v21 = vmax.f32 %v3275_v30, %v3271_v15 }
 0x28a   : > { %v1246_v10 = vadd.f32 %v1245_v32, %v1244_v26  ;;  %v1258_v9 = vadd.f32 %v1257_v63, %v1256_v60  ;;  %v3281_v27 = vadd.f32 %v1240_v46, %v1239_v58  ;;  %v1277_v54 = vmax.f32 %v1273_v14, %v3283_v59 }
 0x28c   : > { %v1247_v23 = vrot.slane %v1246_v10, 1  ;;  %v1259_v16 = vrot.slane %v1258_v9, 2  ;;  %v1275_v22 = vmax.f32 %v3287_v52, %v3281_v27 }
 0x28e   : > { %v3273_v62 = vadd.f32 %v1247_v23, %v1246_v10  ;;  %v1260_v17 = vadd.f32 %v1259_v16, %v1258_v9 }
 0x290   : > { %v1261_v31 = vrot.slane %v1260_v17, 1  ;;  %v1276_v9 = vmax.f32 %v3279_v19, %v3273_v62 }
 0x292   : > { %v3291_v10 = vadd.f32 %v1261_v31, %v1260_v17  ;;  %v1280_v26 = vmax.f32 %v1275_v22, %v1276_v9 }
 0x294   : > { %3657 = vst [vmem:[#allocation14_spill] sm:$0xff] %v3291_v10  ;;  %v1278_v47 = vmax.f32 %v1274_v21, %v3291_v10 }
 0x296   : > { %v1279_v60 = vmax.f32 %v1277_v54, %v1278_v47 }
 0x298   : > { %v1281_v28 = vmax.f32 %v1279_v60, %v1280_v26 }
 0x29a   : > { %v1283_v13 = vsub.f32 %v3275_v30, %v1281_v28  ;;  %v1284_v38 = vsub.f32 %v3287_v52, %v1281_v28  ;;  %v1285_v58 = vsub.f32 %v3279_v19, %v1281_v28  ;;  %v1286_v32 = vsub.f32 %v3267_v6, %v1281_v28 }
 0x29b   : > { %v1287_v63 = vsub.f32 %v3271_v15, %v1281_v28  ;;  %v1291_v39 = vsub.f32 %v3291_v10, %v1281_v28  ;;  %v1282_v35 = vsub.f32 %v3269_v57, %v1281_v28  ;;  %v1288_v43 = vsub.f32 %v3281_v27, %v1281_v28 }
 0x29c   : > { %v1294_v12 = vmul.f32 1.442695, %v1283_v13  ;;  %v1296_v34 = vmul.f32 1.442695, %v1284_v38  ;;  %v1298_v40 = vmul.f32 1.442695, %v1285_v58  ;;  %v1289_v23 = vsub.f32 %v3273_v62, %v1281_v28 }
 0x29d   : > { %v1300_v46 = vmul.f32 1.442695, %v1286_v32  ;;  %v1302_v16 = vmul.f32 1.442695, %v1287_v63  ;;  %v1290_v45 = vsub.f32 %v3283_v59, %v1281_v28  ;;  %v1310_v61 = vmul.f32 1.442695, %v1291_v39 }
 0x29e   : > { %2609 = vpow2.f32 %v1294_v12  ;;  %v1292_v17 = vmul.f32 1.442695, %v1282_v35  ;;  %v1304_v14 = vmul.f32 1.442695, %v1288_v43  ;;  %v1306_v31 = vmul.f32 1.442695, %v1289_v23 }
 0x29f   : > { %2611 = vpow2.f32 %v1296_v34  ;;  %v1308_v21 = vmul.f32 1.442695, %v1290_v45 }
 0x2a0   : > { %2613 = vpow2.f32 %v1298_v40 }
 0x2a1   : > { %2615 = vpow2.f32 %v1300_v46 }
 0x2a2   : > { %2617 = vpow2.f32 %v1302_v16 }
 0x2a3   : > { %2619 = vpow2.f32 %v1310_v61 }
 0x2a4   : > { %2621 = vpow2.f32 %v1292_v17 }
 0x2a5   : > { %2623 = vpow2.f32 %v1304_v14 }
 0x2a6   : > { %2625 = vpow2.f32 %v1306_v31 }
 0x2a7   : > { %2627 = vpow2.f32 %v1308_v21 }
 0x2ab   : > { %v2610_v9 = vpop.eup %2609 }
 0x2ac   : > { %v2612_v54 = vpop.eup %2611  ;;  %v1322_v26 = vrot.slane %v2610_v9, 7 }
 0x2ad   : > { %v2614_v22 = vpop.eup %2613  ;;  %v1324_v28 = vrot.slane %v2612_v54, 6 }
 0x2ae   : > { %v2616_v47 = vpop.eup %2615  ;;  %v1326_v12 = vrot.slane %v2614_v22, 5 }
 0x2af   : > { %v2618_v60 = vpop.eup %2617  ;;  %v1328_v40 = vrot.slane %v2616_v47, 4 }
 0x2b0   : > { %v3307_v13 = vpop.eup %2619  ;;  %v1330_v46 = vrot.slane %v2618_v60, 3 }
 0x2b1   : > { %v2622_v38 = vpop.eup %2621  ;;  %v1336_v58 = vrot.slane %v3307_v13, 7 }
 0x2b2   : > { %v2624_v32 = vpop.eup %2623  ;;  %v1323_v63 = vsel %vm890_vm1, %v1322_v26, %v2622_v38 }
 0x2b3   : > { %v2626_v39 = vpop.eup %2625  ;;  %v1325_v34 = vsel %vm892_vm2, %v1324_v28, %v1323_v63  ;;  %v1332_v45 = vrot.slane %v2624_v32, 2 }
 0x2b4   : > { %v2628_v35 = vpop.eup %2627  ;;  %v1327_v43 = vsel %vm894_vm3, %v1326_v12, %v1325_v34  ;;  %v1334_v17 = vrot.slane %v2626_v39, 1 }
 0x2b5   : > { %v1337_v23 = vsel %vm890_vm1, %v1336_v58, %v2628_v35  ;;  %v1329_v16 = vsel %vm896_vm4, %v1328_v40, %v1327_v43 }
 0x2b6   : > { %v1331_v61 = vsel %vm898_vm5, %v1330_v46, %v1329_v16  ;;  %v1341_v31 = vsel %vm1340_vm14, %v1337_v23, 0.0 }
 0x2b7   : > { %v1333_v14 = vsel %vm900_vm6, %v1332_v45, %v1331_v61 }
 0x2b8   : > { %v1335_v21 = vsel %vm902_vm7, %v1334_v17, %v1333_v14 }
 0x2b9   : > { %v1342_v26 = vadd.f32 %v1341_v31, %v1335_v21 }
 0x2bb   : > { %v1343_v28 = vrot.slane %v1342_v26, 4 }
 0x2bd   : > { %v1344_v63 = vadd.f32 %v1343_v28, %v1342_v26 }
 0x2bf   : > { %v1345_v12 = vrot.slane %v1344_v63, 2 }
 0x2c1   : > { %v1346_v34 = vadd.f32 %v1345_v12, %v1344_v63 }
 0x2c3   : > { %v1347_v10 = vrot.slane %v1346_v34, 1 }
 0x2c5   : > { %v1348_v52 = vadd.f32 %v1347_v10, %v1346_v34 }
 0x2c7   : > { %v1352_v58 = vrot.slane %v1348_v52, %v2889_v3 }
 0x2c9   : > { %2629 = vrcp.f32 %v1352_v58 }
 0x2d6   : > { %v2630_v40 = vpop.eup %2629 }
 0x2d7   : > { %v1354_v43 = vmul.f32 %v2630_v40, %v2622_v38  ;;  %v1356_v46 = vmul.f32 %v2630_v40, %v2612_v54  ;;  %v1355_v16 = vmul.f32 %v2630_v40, %v2610_v9  ;;  %v1357_v61 = vmul.f32 %v2630_v40, %v2614_v22 }
 0x2d8   : > { %v1358_v9 = vmul.f32 %v2630_v40, %v2616_v47  ;;  %v1359_v26 = vmul.f32 %v2630_v40, %v2618_v60  ;;  %v1360_v34 = vmul.f32 %v2630_v40, %v2624_v32 }
 0x2d9   : > { %v1367_v45 = vrot.slane %v1354_v43, %v2889_v3  ;;  %v1375_v14 = vrot.slane %v1356_v46, %v2889_v3  ;;  %v1371_v31 = vrot.slane %v1355_v16, %v2889_v3  ;;  %v1379_v54 = vrot.slane %v1357_v61, %v2889_v3 }
 0x2da   : > { %v1383_v21 = vrot.slane %v1358_v9, %v2889_v3  ;;  %v1387_v12 = vrot.slane %v1359_v26, %v2889_v3  ;;  %v1391_v43 = vrot.slane %v1360_v34, %v2889_v3  ;;  %v1361_v46 = vmul.f32 %v2630_v40, %v2626_v39 }
 0x2db   : > { %v1405_v23 = vmul.f32 %v1367_v45, %v2992_v24  ;;  %v1404_v17 = vmul.f32 %v1367_v45, %v2976_v36  ;;  %v1409_v52 = vmul.f32 %v1375_v14, %v3001_v42  ;;  %v1406_v10 = vmul.f32 %v1371_v31, %v2970_v20 }
 0x2dc   : > { %v1411_v22 = vmul.f32 %v1379_v54, %v3027_v44  ;;  %v1407_v38 = vmul.f32 %v1371_v31, %v2984_v55  ;;  %v1413_v28 = vmul.f32 %v1383_v21, %v3047_v2  ;;  %v1408_v63 = vmul.f32 %v1375_v14, %v3017_v49 }
 0x2dd   : > { %1426 = vadd.xlane.f32.xlu1 %v1405_v23  ;;  %1424 = vadd.xlane.f32.xlu0 %v1404_v17  ;;  %v1415_v47 = vmul.f32 %v1387_v12, %v3072_v50  ;;  %v1410_v58 = vmul.f32 %v1379_v54, %v3038_v37  ;;  %v1417_v60 = vmul.f32 %v1391_v43, %v3654_v56 }
 0x2de   : > { %v1412_v16 = vmul.f32 %v1383_v21, %v3058_v53  ;;  %v1395_v45 = vrot.slane %v1361_v46, %v2889_v3  ;;  %v1362_v61 = vmul.f32 %v2630_v40, %v2628_v35  ;;  %v1414_v23 = vmul.f32 %v1387_v12, %v3082_v33 }
 0x2df   : > { %v1363_v14 = vmul.f32 %v2630_v40, %v3307_v13  ;;  %v1416_v31 = vmul.f32 %v1391_v43, %v3102_v51 }
 0x2e0   : > { %v1419_v32 = vmul.f32 %v1395_v45, %v3655_v29  ;;  %v1399_v17 = vrot.slane %v1362_v61, %v2889_v3 }
 0x2e1   : > { %1434 = vadd.xlane.f32.xlu1 %v1409_v52  ;;  %1428 = vadd.xlane.f32.xlu0 %v1406_v10  ;;  %v1403_v52 = vrot.slane %v1363_v14, %v2889_v3  ;;  %v1418_v10 = vmul.f32 %v1395_v45, %v3127_v48 }
 0x2e2   : > { %v1421_v39 = vmul.f32 %v1399_v17, %v3137_v0  ;;  %v1420_v54 = vmul.f32 %v1399_v17, %v3145_v18 }
 0x2e3   : > { %v1423_v35 = vmul.f32 %v1403_v52, %v3149_v1  ;;  %v1422_v13 = vmul.f32 %v1403_v52, %v3153_v25 }
 0x2e5   : > { %1438 = vadd.xlane.f32.xlu1 %v1411_v22  ;;  %1430 = vadd.xlane.f32.xlu0 %v1407_v38 }
 0x2e9   : > { %1442 = vadd.xlane.f32.xlu1 %v1413_v28  ;;  %1432 = vadd.xlane.f32.xlu0 %v1408_v63 }
 0x2ed   : > { %1446 = vadd.xlane.f32.xlu1 %v1415_v47  ;;  %1436 = vadd.xlane.f32.xlu0 %v1410_v58 }
 0x2f1   : > { %1450 = vadd.xlane.f32.xlu1 %v1417_v60  ;;  %1440 = vadd.xlane.f32.xlu0 %v1412_v16 }
 0x2f5   : > { %1454 = vadd.xlane.f32.xlu1 %v1419_v32  ;;  %1444 = vadd.xlane.f32.xlu0 %v1414_v23 }
 0x2f9   : > { %1458 = vadd.xlane.f32.xlu1 %v1421_v39  ;;  %1448 = vadd.xlane.f32.xlu0 %v1416_v31 }
 0x2fd   : > { %1462 = vadd.xlane.f32.xlu1 %v1423_v35  ;;  %1452 = vadd.xlane.f32.xlu0 %v1418_v10 }
 0x301   : > { %1456 = vadd.xlane.f32.xlu0 %v1420_v54 }
 0x305   : > { %1460 = vadd.xlane.f32.xlu0 %v1422_v13 }
 0x366   : > { %v1427_v40 = vpop.xlane.xlu1 %1426  ;;  %v1425_v9 = vpop.xlane.xlu0 %1424 }
 0x367   : > { %v1663_v22 = vrot.slane %v1427_v40, %v2936_v41  ;;  %v1659_v38 = vrot.slane %v1425_v9, %v2905_v11  ;;  %v1465_v14 = vmul.f32 %v1427_v40, %v1427_v40  ;;  %v1464_v52 = vmul.f32 %v1425_v9, %v1425_v9 }
 0x369   : > { %v1664_v21 = vsel %vm807_vm0, %v1663_v22, %v1659_v38 }
 0x36a   : > { %v1435_v26 = vpop.xlane.xlu1 %1434  ;;  %v1429_v28 = vpop.xlane.xlu0 %1428 }
 0x36b   : > { %v1668_v34 = vrot.slane %v1429_v28, %v2905_v11  ;;  %v1681_v16 = vrot.slane %v1435_v26, %v2936_v41  ;;  %v1466_v35 = vmul.f32 %v1429_v28, %v1429_v28 }
 0x36e   : > { %v1439_v63 = vpop.xlane.xlu1 %1438  ;;  %v1431_v12 = vpop.xlane.xlu0 %1430 }
 0x36f   : > { %v1672_v47 = vrot.slane %v1431_v12, %v2936_v41  ;;  %v1690_v39 = vrot.slane %v1439_v63, %v2936_v41  ;;  %v1467_v10 = vmul.f32 %v1431_v12, %v1431_v12  ;;  %v1471_v9 = vmul.f32 %v1439_v63, %v1439_v63 }
 0x370   : > { %v1516_v12 = vrot.slane %v1466_v35, %v2905_v11 }
 0x371   : > { %v1673_v58 = vsel %vm807_vm0, %v1672_v47, %v1668_v34  ;;  %v1511_v34 = vrot.slane %v1465_v14, %v2936_v41 }
 0x372   : > { %v1746_v43 = vsel %vm890_vm1, %v1673_v58, %v1664_v21  ;;  %v1443_v46 = vpop.xlane.xlu1 %1442  ;;  %v1433_v60 = vpop.xlane.xlu0 %1432 }
 0x373   : > { %v1677_v45 = vrot.slane %v1433_v60, %v2905_v11  ;;  %v1468_v38 = vmul.f32 %v1433_v60, %v1433_v60  ;;  %v1699_v47 = vrot.slane %v1443_v46, %v2936_v41 }
 0x375   : > { %v1682_v61 = vsel %vm807_vm0, %v1681_v16, %v1677_v45  ;;  %v1469_v16 = vmul.f32 %v1435_v26, %v1435_v26  ;;  %v1520_v45 = vrot.slane %v1467_v10, %v2936_v41  ;;  %v1525_v14 = vrot.slane %v1468_v38, %v2905_v11 }
 0x376   : > { %v1447_v32 = vpop.xlane.xlu1 %1446  ;;  %v1437_v23 = vpop.xlane.xlu0 %1436  ;;  %v1747_v17 = vsel %vm892_vm2, %v1682_v61, %v1746_v43  ;;  %v1507_v43 = vrot.slane %v1464_v52, %v2905_v11 }
 0x377   : > { %v1686_v31 = vrot.slane %v1437_v23, %v2905_v11  ;;  %v1470_v58 = vmul.f32 %v1437_v23, %v1437_v23  ;;  %v1529_v10 = vrot.slane %v1469_v16, %v2936_v41  ;;  %v1521_v38 = vsel %vm807_vm0, %v1520_v45, %v1516_v12 }
 0x378   : > { %v1512_v35 = vsel %vm807_vm0, %v1511_v34, %v1507_v43 }
 0x379   : > { %v1691_v54 = vsel %vm807_vm0, %v1690_v39, %v1686_v31  ;;  %v1473_v39 = vmul.f32 %v1443_v46, %v1443_v46  ;;  %v1475_v31 = vmul.f32 %v1447_v32, %v1447_v32  ;;  %v1534_v26 = vrot.slane %v1470_v58, %v2905_v11 }
 0x37a   : > { %v1451_v13 = vpop.xlane.xlu1 %1450  ;;  %v1441_v22 = vpop.xlane.xlu0 %1440  ;;  %v1748_v21 = vsel %vm894_vm3, %v1691_v54, %v1747_v17  ;;  %v1708_v54 = vrot.slane %v1447_v32, %v2936_v41 }
 0x37b   : > { %v1695_v40 = vrot.slane %v1441_v22, %v2905_v11  ;;  %v1472_v28 = vmul.f32 %v1441_v22, %v1441_v22  ;;  %v1538_v22 = vrot.slane %v1471_v9, %v2936_v41  ;;  %v1547_v58 = vrot.slane %v1473_v39, %v2936_v41 }
 0x37c   : > { %v1556_v16 = vrot.slane %v1475_v31, %v2936_v41 }
 0x37d   : > { %v1700_v60 = vsel %vm807_vm0, %v1699_v47, %v1695_v40  ;;  %v1543_v46 = vrot.slane %v1472_v28, %v2905_v11  ;;  %v1477_v47 = vmul.f32 %v1451_v13, %v1451_v13  ;;  %v1539_v9 = vsel %vm807_vm0, %v1538_v22, %v1534_v26 }
 0x37e   : > { %v1455_v61 = vpop.xlane.xlu1 %1454  ;;  %v1445_v17 = vpop.xlane.xlu0 %1444  ;;  %v1749_v23 = vsel %vm896_vm4, %v1700_v60, %v1748_v21  ;;  %v1530_v60 = vsel %vm807_vm0, %v1529_v10, %v1525_v14  ;;  %v1717_v28 = vrot.slane %v1451_v13, %v2936_v41 }
 0x37f   : > { %v1474_v63 = vmul.f32 %v1445_v17, %v1445_v17  ;;  %v1704_v52 = vrot.slane %v1445_v17, %v2905_v11  ;;  %v1594_v17 = vsel %vm890_vm1, %v1521_v38, %v1512_v35  ;;  %v1726_v35 = vrot.slane %v1455_v61, %v2936_v41 }
 0x380   : > { %v1595_v14 = vsel %vm892_vm2, %v1530_v60, %v1594_v17 }
 0x381   : > { %v1552_v21 = vrot.slane %v1474_v63, %v2905_v11  ;;  %v1709_v32 = vsel %vm807_vm0, %v1708_v54, %v1704_v52  ;;  %v1548_v54 = vsel %vm807_vm0, %v1547_v58, %v1543_v46  ;;  %v1479_v63 = vmul.f32 %v1455_v61, %v1455_v61 }
 0x382   : > { %v1449_v40 = vpop.xlane.xlu0 %1448  ;;  %v1750_v34 = vsel %vm898_vm5, %v1709_v32, %v1749_v23  ;;  %v1459_v12 = vpop.xlane.xlu1 %1458  ;;  %v1565_v23 = vrot.slane %v1477_v47, %v2936_v41  ;;  %v1596_v22 = vsel %vm894_vm3, %v1539_v9, %v1595_v14 }
 0x383   : > { %v1476_v43 = vmul.f32 %v1449_v40, %v1449_v40  ;;  %v1713_v45 = vrot.slane %v1449_v40, %v2905_v11  ;;  %v1557_v26 = vsel %vm807_vm0, %v1556_v16, %v1552_v21  ;;  %v1597_v32 = vsel %vm896_vm4, %v1548_v54, %v1596_v22 }
 0x384   : > { %v1574_v47 = vrot.slane %v1479_v63, %v2936_v41  ;;  %v1598_v58 = vsel %vm898_vm5, %v1557_v26, %v1597_v32  ;;  %v1735_v21 = vrot.slane %v1459_v12, %v2936_v41  ;;  %v1481_v54 = vmul.f32 %v1459_v12, %v1459_v12 }
 0x385   : > { %v1561_v39 = vrot.slane %v1476_v43, %v2905_v11  ;;  %v1718_v31 = vsel %vm807_vm0, %v1717_v28, %v1713_v45 }
 0x386   : > { %v1453_v52 = vpop.xlane.xlu0 %1452  ;;  %v1751_v13 = vsel %vm900_vm6, %v1718_v31, %v1750_v34  ;;  %v1463_v60 = vpop.xlane.xlu1 %1462  ;;  %v1583_v26 = vrot.slane %v1481_v54, %v2936_v41 }
 0x387   : > { %v1478_v10 = vmul.f32 %v1453_v52, %v1453_v52  ;;  %v1722_v46 = vrot.slane %v1453_v52, %v2905_v11  ;;  %v1566_v38 = vsel %vm807_vm0, %v1565_v23, %v1561_v39  ;;  %v1483_v63 = vmul.f32 %v1463_v60, %v1463_v60 }
 0x388   : > { %v1599_v61 = vsel %vm900_vm6, %v1566_v38, %v1598_v58 }
 0x389   : > { %v1570_v40 = vrot.slane %v1478_v10, %v2905_v11  ;;  %v1727_v34 = vsel %vm807_vm0, %v1726_v35, %v1722_v46 }
 0x38a   : > { %v1457_v43 = vpop.xlane.xlu0 %1456  ;;  %v1752_v16 = vsel %vm902_vm7, %v1727_v34, %v1751_v13  ;;  %v1592_v13 = vrot.slane %v1483_v63, %v2936_v41 }
 0x38b   : > { %v1480_v9 = vmul.f32 %v1457_v43, %v1457_v43  ;;  %v1731_v28 = vrot.slane %v1457_v43, %v2905_v11  ;;  %v1575_v45 = vsel %vm807_vm0, %v1574_v47, %v1570_v40 }
 0x38c   : > { %v1600_v17 = vsel %vm902_vm7, %v1575_v45, %v1599_v61 }
 0x38d   : > { %v1736_v39 = vsel %vm807_vm0, %v1735_v21, %v1731_v28  ;;  %v1604_v14 = vsel %vm907_vm8, %v1600_v17, 0.0  ;;  %v1579_v31 = vrot.slane %v1480_v9, %v2905_v11 }
 0x38e   : > { %1605 = vadd.xlane.f32.xlu0 %v1604_v14  ;;  %v1461_v23 = vpop.xlane.xlu0 %1460 }
 0x38f   : > { %v1482_v52 = vmul.f32 %v1461_v23, %v1461_v23  ;;  %v1584_v22 = vsel %vm807_vm0, %v1583_v26, %v1579_v31 }
 0x391   : > { %v1588_v10 = vrot.slane %v1482_v52, %v2905_v11  ;;  %v1740_v52 = vrot.slane %v1461_v23, %v2905_v11 }
 0x393   : > { %v1593_v12 = vsel %vm807_vm0, %v1592_v13, %v1588_v10  ;;  %v1744_v13 = vrot.slane %v1463_v60, %v2936_v41 }
 0x394   : > { %v1601_v35 = vsel %vm890_vm1, %v1593_v12, %v1584_v22 }
 0x395   : > { %v1607_v46 = vsel %vm911_vm9, %v1601_v35, 0.0  ;;  %v1745_v22 = vsel %vm807_vm0, %v1744_v13, %v1740_v52 }
 0x396   : > { %1608 = vadd.xlane.f32.xlu1 %v1607_v46 }
 0x417   : > { %v1606_v38 = vpop.xlane.xlu0 %1605 }
 0x418   : > { %2631 = vrsqrt.f32 %v1606_v38  ;;  %vm1612_vm15 = vcmp.eq.f32.partialorder %v1606_v38, inf  ;;  %v1615_v21 = vand.u32 2147483648, %v1606_v38  ;;  %vm1614_vm10 = vcmp.eq.f32.partialorder %v1606_v38, 0.0 }
 0x419   : > { %v1624_v43 = vadd.f32 1.0, %v1606_v38 }
 0x41f   : > { %v1609_v32 = vpop.xlane.xlu1 %1608 }
 0x420   : > { %2633 = vrsqrt.f32 %v1609_v32  ;;  %v1625_v61 = vadd.f32 1.0, %v1609_v32  ;;  %vm1619_vm11 = vcmp.eq.f32.partialorder %v1609_v32, inf  ;;  %v1622_v17 = vand.u32 2147483648, %v1609_v32 }
 0x421   : > { %2635 = vrcp.f32 %v1624_v43  ;;  %vm1621_vm12 = vcmp.eq.f32.partialorder %v1609_v32, 0.0 }
 0x422   : > { %2637 = vrcp.f32 %v1625_v61 }
 0x425   : > { %v2632_v47 = vpop.eup %2631 }
 0x426   : > { %v1611_v40 = vmul.f32 %v2632_v47, %v1606_v38 }
 0x428   : > { %v1613_v58 = vsel %vm1612_vm15, %v1606_v38, %v1611_v40 }
 0x429   : > { %v1616_v34 = vsel %vm1614_vm10, %v1615_v21, %v1613_v58  ;;  %v1753_v58 = vsel %vm890_vm1, %v1745_v22, %v1736_v39  ;;  %v3658_v39 = vld [vmem:[#allocation8_spill] sm:$0xff] }
 0x42a   : > { %v1630_v28 = vadd.f32 1e-08, %v1616_v34 }
 0x42c   : > { %2639 = vrcp.f32 %v1630_v28 }
 0x42d   : > { %v2634_v9 = vpop.eup %2633 }
 0x42e   : > { %v1618_v45 = vmul.f32 %v2634_v9, %v1609_v32  ;;  %v2636_v31 = vpop.eup %2635  ;;  %v3659_v9 = vld [vmem:[#allocation9_spill] sm:$0xff] }
 0x42f   : > { %v2638_v26 = vpop.eup %2637  ;;  %v1627_v12 = vmul.f32 %v2636_v31, %v1606_v38 }
 0x430   : > { %v1620_v54 = vsel %vm1619_vm11, %v1609_v32, %v1618_v45  ;;  %v1629_v35 = vmul.f32 %v2638_v26, %v1609_v32  ;;  %v3660_v45 = vld [vmem:[#allocation10_spill] sm:$0xff] }
 0x431   : > { %v1623_v63 = vsel %vm1621_vm12, %v1622_v17, %v1620_v54 }
 0x432   : > { %v1631_v14 = vadd.f32 1e-08, %v1623_v63 }
 0x434   : > { %2641 = vrcp.f32 %v1631_v14 }
 0x439   : > { %v2640_v10 = vpop.eup %2639 }
 0x43a   : > { %v1633_v47 = vmul.f32 %v2640_v10, %v1627_v12 }
 0x43c   : > { %v1756_v34 = vmul.f32 %v1752_v16, %v1633_v47 }
 0x43e   : > { %v1761_v23 = vrot.slane %v1756_v34, %v2889_v3  ;;  %v1772_v60 = vrot.slane %v1756_v34, %v2891_v4  ;;  %v1805_v38 = vrot.slane %v1756_v34, %v2897_v7  ;;  %v1816_v32 = vrot.slane %v1756_v34, %v2899_v8 }
 0x43f   : > { %v1783_v16 = vrot.slane %v1756_v34, %v2893_v5  ;;  %v1794_v61 = vrot.slane %v1756_v34, %v3658_v39  ;;  %v1827_v28 = vrot.slane %v1756_v34, %v3659_v9  ;;  %v1838_v7 = vrot.slane %v1756_v34, %v3660_v45 }
 0x441   : > { %v2642_v46 = vpop.eup %2641 }
 0x442   : > { %v1635_v40 = vmul.f32 %v2642_v46, %v1629_v35 }
 0x444   : > { %v1757_v21 = vmul.f32 %v1753_v58, %v1635_v40 }
 0x446   : > { %v1849_v43 = vrot.slane %v1757_v21, %v2889_v3  ;;  %v1860_v8 = vrot.slane %v1757_v21, %v2891_v4 }
 0x448   : > { %1855 = vbcast.lane.b32.xlu1 %v1849_v43, 264  ;;  %1851 = vbcast.lane.b32.xlu0 %v1849_v43, 256 }
 0x44c   : > { %1767 = vbcast.lane.b32.xlu1 %v1761_v23, 264  ;;  %1763 = vbcast.lane.b32.xlu0 %v1761_v23, 256 }
 0x450   : > { %1774 = vbcast.lane.b32.xlu1 %v1772_v60, 256  ;;  %1807 = vbcast.lane.b32.xlu0 %v1805_v38, 256 }
 0x454   : > { %1778 = vbcast.lane.b32.xlu1 %v1772_v60, 264  ;;  %1818 = vbcast.lane.b32.xlu0 %v1816_v32, 256 }
 0x458   : > { %1811 = vbcast.lane.b32.xlu1 %v1805_v38, 264  ;;  %1785 = vbcast.lane.b32.xlu0 %v1783_v16, 256 }
 0x45c   : > { %1822 = vbcast.lane.b32.xlu1 %v1816_v32, 264  ;;  %1796 = vbcast.lane.b32.xlu0 %v1794_v61, 256 }
 0x460   : > { %1789 = vbcast.lane.b32.xlu1 %v1783_v16, 264  ;;  %1829 = vbcast.lane.b32.xlu0 %v1827_v28, 256 }
 0x464   : > { %1800 = vbcast.lane.b32.xlu1 %v1794_v61, 264  ;;  %1840 = vbcast.lane.b32.xlu0 %v1838_v7, 256 }
 0x468   : > { %1833 = vbcast.lane.b32.xlu1 %v1827_v28, 264  ;;  %1862 = vbcast.lane.b32.xlu0 %v1860_v8, 256 }
 0x46c   : > { %1844 = vbcast.lane.b32.xlu1 %v1838_v7, 264 }
 0x470   : > { %1866 = vbcast.lane.b32.xlu1 %v1860_v8, 264 }
 0x4ba   : > { %v1856_v5 = vpop.permute.xlu1 %1855  ;;  %v1852_v17 = vpop.permute.xlu0 %1851 }
 0x4bb   : > { %v1885_v34 = vmul.f32 %v1856_v5, %v3137_v0  ;;  %v1884_v23 = vmul.f32 %v1852_v17, %v3145_v18 }
 0x4bd   : > { %v1944_v7 = vadd.f32 %v1885_v34, %v1884_v23 }
 0x4be   : > { %v1768_v54 = vpop.permute.xlu1 %1767  ;;  %v1764_v63 = vpop.permute.xlu0 %1763 }
 0x4bf   : > { %v1869_v12 = vmul.f32 %v1768_v54, %v2992_v24  ;;  %v1868_v4 = vmul.f32 %v1764_v63, %v2976_v36 }
 0x4c1   : > { %v1888_v60 = vadd.f32 %v1869_v12, %v1868_v4 }
 0x4c2   : > { %v1775_v14 = vpop.permute.xlu1 %1774  ;;  %v1808_v31 = vpop.permute.xlu0 %1807 }
 0x4c3   : > { %v1876_v47 = vmul.f32 %v1808_v31, %v3058_v53  ;;  %v1870_v38 = vmul.f32 %v1775_v14, %v2970_v20  ;;  %v1889_v8 = vrot.slane %v1888_v60, 4 }
 0x4c6   : > { %v1779_v52 = vpop.permute.xlu1 %1778  ;;  %v1819_v26 = vpop.permute.xlu0 %1818 }
 0x4c7   : > { %v1871_v58 = vmul.f32 %v1779_v52, %v2984_v55  ;;  %v1878_v21 = vmul.f32 %v1819_v26, %v3082_v33  ;;  %v1945_v26 = vrot.slane %v1944_v7, 4 }
 0x4c9   : > { %v1895_v61 = vadd.f32 %v1871_v58, %v1870_v38  ;;  %v1946_v38 = vadd.f32 %v1945_v26, %v1944_v7 }
 0x4ca   : > { %v1812_v13 = vpop.permute.xlu1 %1811  ;;  %v1786_v10 = vpop.permute.xlu0 %1785 }
 0x4cb   : > { %v1877_v22 = vmul.f32 %v1812_v13, %v3047_v2  ;;  %v1872_v45 = vmul.f32 %v1786_v10, %v3017_v49  ;;  %v1896_v31 = vrot.slane %v1895_v61, 4  ;;  %v1890_v13 = vadd.f32 %v1889_v8, %v1888_v60 }
 0x4cd   : > { %v1916_v43 = vadd.f32 %v1877_v22, %v1876_v47  ;;  %v1897_v58 = vadd.f32 %v1896_v31, %v1895_v61  ;;  %v1947_v61 = vrot.slane %v1946_v38, 2 }
 0x4ce   : > { %v1823_v35 = vpop.permute.xlu1 %1822  ;;  %v1797_v46 = vpop.permute.xlu0 %1796 }
 0x4cf   : > { %v1879_v40 = vmul.f32 %v1823_v35, %v3072_v50  ;;  %v1917_v28 = vrot.slane %v1916_v43, 4  ;;  %v1874_v17 = vmul.f32 %v1797_v46, %v3038_v37  ;;  %v1891_v46 = vrot.slane %v1890_v13, 2 }
 0x4d1   : > { %v1923_v32 = vadd.f32 %v1879_v40, %v1878_v21  ;;  %v1918_v14 = vadd.f32 %v1917_v28, %v1916_v43  ;;  %v1892_v31 = vadd.f32 %v1891_v46, %v1890_v13 }
 0x4d2   : > { %v1790_v16 = vpop.permute.xlu1 %1789  ;;  %v1830_v9 = vpop.permute.xlu0 %1829 }
 0x4d3   : > { %v1873_v39 = vmul.f32 %v1790_v16, %v3001_v42  ;;  %v1924_v54 = vrot.slane %v1923_v32, 4  ;;  %v1880_v10 = vmul.f32 %v1830_v9, %v3102_v51  ;;  %v1919_v34 = vrot.slane %v1918_v14, 2 }
 0x4d5   : > { %v1902_v5 = vadd.f32 %v1873_v39, %v1872_v45  ;;  %v1925_v22 = vadd.f32 %v1924_v54, %v1923_v32  ;;  %v1898_v32 = vrot.slane %v1897_v58, 2  ;;  %v1920_v9 = vadd.f32 %v1919_v34, %v1918_v14 }
 0x4d6   : > { %v1801_v63 = vpop.permute.xlu1 %1800  ;;  %v1841_v4 = vpop.permute.xlu0 %1840  ;;  %v1948_v14 = vadd.f32 %v1947_v61, %v1946_v38 }
 0x4d7   : > { %v1875_v52 = vmul.f32 %v1801_v63, %v3027_v44  ;;  %v1903_v47 = vrot.slane %v1902_v5, 4  ;;  %v1926_v16 = vrot.slane %v1925_v22, 2  ;;  %v1882_v45 = vmul.f32 %v1841_v4, %v3127_v48 }
 0x4d8   : > { %v1921_v4 = vrot.slane %v1920_v9, 1 }
 0x4d9   : > { %v1909_v12 = vadd.f32 %v1875_v52, %v1874_v17  ;;  %v1904_v28 = vadd.f32 %v1903_v47, %v1902_v5  ;;  %v1927_v52 = vadd.f32 %v1926_v16, %v1925_v22  ;;  %v1899_v47 = vadd.f32 %v1898_v32, %v1897_v58 }
 0x4da   : > { %v1834_v35 = vpop.permute.xlu1 %1833  ;;  %v1863_v8 = vpop.permute.xlu0 %1862 }
 0x4db   : > { %v1881_v40 = vmul.f32 %v1834_v35, %v3654_v56  ;;  %v1910_v21 = vrot.slane %v1909_v12, 4  ;;  %v1905_v26 = vrot.slane %v1904_v28, 2  ;;  %v1900_v46 = vrot.slane %v1899_v47, 1 }
 0x4dd   : > { %v1930_v23 = vadd.f32 %v1881_v40, %v1880_v10  ;;  %v1911_v39 = vadd.f32 %v1910_v21, %v1909_v12  ;;  %v1886_v12 = vmul.f32 %v1863_v8, %v3153_v25  ;;  %v1906_v13 = vadd.f32 %v1905_v26, %v1904_v28 }
 0x4de   : > { %v1845_v43 = vpop.permute.xlu1 %1844  ;;  %v1949_v25 = vrot.slane %v1948_v14, 1 }
 0x4df   : > { %v1931_v60 = vrot.slane %v1930_v23, 4  ;;  %v1883_v54 = vmul.f32 %v1845_v43, %v3655_v29  ;;  %v1912_v63 = vrot.slane %v1911_v39, 2  ;;  %v1907_v18 = vrot.slane %v1906_v13, 1 }
 0x4e0   : > { %v1950_v26 = vadd.f32 %v1949_v25, %v1948_v14  ;;  %v3661_v25 = vld [vmem:[#allocation13_spill] sm:$0xff]  ;;  %v3662_v14 = vld [vmem:[#allocation14_spill] sm:$0xff] }
 0x4e1   : > { %v1932_v17 = vadd.f32 %v1931_v60, %v1930_v23  ;;  %v1937_v35 = vadd.f32 %v1883_v54, %v1882_v45  ;;  %v1913_v21 = vadd.f32 %v1912_v63, %v1911_v39  ;;  %v1893_v23 = vrot.slane %v1892_v31, 1 }
 0x4e2   : > { %v1867_v7 = vpop.permute.xlu1 %1866  ;;  %v1928_v60 = vrot.slane %v1927_v52, 1  ;;  %v1922_v45 = vadd.f32 %v1921_v4, %v1920_v9  ;;  %v1901_v63 = vadd.f32 %v1900_v46, %v1899_v47 }
 0x4e3   : > { %v1933_v10 = vrot.slane %v1932_v17, 2  ;;  %v1887_v5 = vmul.f32 %v1867_v7, %v3149_v1  ;;  %v1938_v40 = vrot.slane %v1937_v35, 4  ;;  %v1914_v54 = vrot.slane %v1913_v21, 1 }
 0x4e4   : > { %v1894_v58 = vadd.f32 %v1893_v23, %v1892_v31  ;;  %v1929_v32 = vadd.f32 %v1928_v60, %v1927_v52  ;;  %v1962_v38 = vadd.f32 %v1922_v45, %v3267_v6  ;;  %v1959_v31 = vadd.f32 %v1901_v63, %v3275_v30 }
 0x4e5   : > { %v1934_v11 = vadd.f32 %v1933_v10, %v1932_v17  ;;  %v1951_v43 = vadd.f32 %v1887_v5, %v1886_v12  ;;  %v1939_v34 = vadd.f32 %v1938_v40, %v1937_v35  ;;  %v1915_v61 = vadd.f32 %v1914_v54, %v1913_v21 }
 0x4e6   : > { %v1958_v9 = vadd.f32 %v1894_v58, %v3269_v57  ;;  %v1963_v12 = vadd.f32 %v1929_v32, %v3271_v15  ;;  %v1908_v5 = vadd.f32 %v1907_v18, %v1906_v13 }
 0x4e7   : > { %v1952_v22 = vrot.slane %v1951_v43, 4  ;;  %v1940_v16 = vrot.slane %v1939_v34, 2  ;;  %v1935_v41 = vrot.slane %v1934_v11, 1  ;;  %v1961_v47 = vadd.f32 %v1915_v61, %v3279_v19 }
 0x4e8   : > { %v1968_v4 = vmax.f32 %v1958_v9, %v1962_v38 }
 0x4e9   : > { %v1953_v8 = vadd.f32 %v1952_v22, %v1951_v43  ;;  %v1941_v7 = vadd.f32 %v1940_v16, %v1939_v34  ;;  %v1936_v35 = vadd.f32 %v1935_v41, %v1934_v11  ;;  %v1966_v11 = vadd.f32 %v1950_v26, %v3283_v59 }
 0x4ea   : > { %v1969_v41 = vmax.f32 %v1959_v31, %v1963_v12  ;;  %v1960_v43 = vadd.f32 %v1908_v5, %v3661_v25 }
 0x4eb   : > { %v1954_v39 = vrot.slane %v1953_v8, 2  ;;  %v1942_v17 = vrot.slane %v1941_v7, 1  ;;  %v1964_v6 = vadd.f32 %v1936_v35, %v3281_v27  ;;  %v1972_v18 = vmax.f32 %v1968_v4, %v1966_v11 }
 0x4ed   : > { %v1955_v28 = vadd.f32 %v1954_v39, %v1953_v8  ;;  %v1943_v10 = vadd.f32 %v1942_v17, %v1941_v7  ;;  %v1970_v34 = vmax.f32 %v1960_v43, %v1964_v6 }
 0x4ef   : > { %v1956_v40 = vrot.slane %v1955_v28, 1  ;;  %v1965_v52 = vadd.f32 %v1943_v10, %v3273_v62 }
 0x4f1   : > { %v1957_v21 = vadd.f32 %v1956_v40, %v1955_v28  ;;  %v1971_v57 = vmax.f32 %v1961_v47, %v1965_v52 }
 0x4f3   : > { %v1967_v15 = vadd.f32 %v1957_v21, %v3662_v14  ;;  %v1975_v30 = vmax.f32 %v1970_v34, %v1971_v57 }
 0x4f5   : > { %v1973_v23 = vmax.f32 %v1969_v41, %v1967_v15 }
 0x4f7   : > { %v1974_v60 = vmax.f32 %v1972_v18, %v1973_v23 }
 0x4f9   : > { %v1976_v62 = vmax.f32 %v1974_v60, %v1975_v30 }
 0x4fb   : > { %v1978_v13 = vsub.f32 %v1959_v31, %v1976_v62  ;;  %v1979_v22 = vsub.f32 %v1960_v43, %v1976_v62  ;;  %v1980_v19 = vsub.f32 %v1961_v47, %v1976_v62  ;;  %v1981_v46 = vsub.f32 %v1962_v38, %v1976_v62 }
 0x4fc   : > { %v1982_v27 = vsub.f32 %v1963_v12, %v1976_v62  ;;  %v1986_v45 = vsub.f32 %v1967_v15, %v1976_v62  ;;  %v1977_v8 = vsub.f32 %v1958_v9, %v1976_v62  ;;  %v1983_v7 = vsub.f32 %v1964_v6, %v1976_v62 }
 0x4fd   : > { %v1989_v16 = vmul.f32 1.442695, %v1978_v13  ;;  %v1991_v59 = vmul.f32 1.442695, %v1979_v22  ;;  %v1993_v54 = vmul.f32 1.442695, %v1980_v19  ;;  %v1984_v32 = vsub.f32 %v1965_v52, %v1976_v62 }
 0x4fe   : > { %v1995_v58 = vmul.f32 1.442695, %v1981_v46  ;;  %v1997_v39 = vmul.f32 1.442695, %v1982_v27  ;;  %v1985_v63 = vsub.f32 %v1966_v11, %v1976_v62  ;;  %v2005_v17 = vmul.f32 1.442695, %v1986_v45 }
 0x4ff   : > { %2643 = vpow2.f32 %v1989_v16  ;;  %v1987_v61 = vmul.f32 1.442695, %v1977_v8  ;;  %v1999_v35 = vmul.f32 1.442695, %v1983_v7  ;;  %v2001_v38 = vmul.f32 1.442695, %v1984_v32 }
 0x500   : > { %2645 = vpow2.f32 %v1991_v59  ;;  %v2003_v28 = vmul.f32 1.442695, %v1985_v63 }
 0x501   : > { %2647 = vpow2.f32 %v1993_v54 }
 0x502   : > { %2649 = vpow2.f32 %v1995_v58 }
 0x503   : > { %2651 = vpow2.f32 %v1997_v39 }
 0x504   : > { %2653 = vpow2.f32 %v2005_v17 }
 0x505   : > { %2655 = vpow2.f32 %v1987_v61 }
 0x506   : > { %2657 = vpow2.f32 %v1999_v35 }
 0x507   : > { %2659 = vpow2.f32 %v2001_v38 }
 0x508   : > { %2661 = vpow2.f32 %v2003_v28 }
 0x50c   : > { %v2644_v26 = vpop.eup %2643 }
 0x50d   : > { %v2646_v10 = vpop.eup %2645  ;;  %v2017_v5 = vrot.slane %v2644_v26, 7 }
 0x50e   : > { %v2648_v9 = vpop.eup %2647  ;;  %v2019_v31 = vrot.slane %v2646_v10, 6 }
 0x50f   : > { %v2650_v12 = vpop.eup %2649  ;;  %v2021_v11 = vrot.slane %v2648_v9, 5 }
 0x510   : > { %v2652_v40 = vpop.eup %2651  ;;  %v2023_v43 = vrot.slane %v2650_v12, 4 }
 0x511   : > { %v3469_v52 = vpop.eup %2653  ;;  %v2025_v15 = vrot.slane %v2652_v40, 3 }
 0x512   : > { %v2656_v4 = vpop.eup %2655  ;;  %v2031_v47 = vrot.slane %v3469_v52, 7 }
 0x513   : > { %v2658_v6 = vpop.eup %2657  ;;  %v2018_v21 = vsel %vm890_vm1, %v2017_v5, %v2656_v4 }
 0x514   : > { %v2660_v41 = vpop.eup %2659  ;;  %v2020_v25 = vsel %vm892_vm2, %v2019_v31, %v2018_v21  ;;  %v2027_v23 = vrot.slane %v2658_v6, 2 }
 0x515   : > { %v2662_v57 = vpop.eup %2661  ;;  %v2022_v14 = vsel %vm894_vm3, %v2021_v11, %v2020_v25  ;;  %v2029_v60 = vrot.slane %v2660_v41, 1 }
 0x516   : > { %v2032_v18 = vsel %vm890_vm1, %v2031_v47, %v2662_v57  ;;  %v2024_v34 = vsel %vm896_vm4, %v2023_v43, %v2022_v14 }
 0x517   : > { %v2026_v30 = vsel %vm898_vm5, %v2025_v15, %v2024_v34  ;;  %v2035_v13 = vsel %vm1340_vm14, %v2032_v18, 0.0  ;;  %v3665_v34 = vld [vmem:[#allocation12_spill] sm:$0xff] }
 0x518   : > { %v2028_v62 = vsel %vm900_vm6, %v2027_v23, %v2026_v30  ;;  %v3666_v23 = vld [vmem:[#allocation11_spill] sm:$0xff] }
 0x519   : > { %v2030_v22 = vsel %vm902_vm7, %v2029_v60, %v2028_v62 }
 0x51a   : > { %v2036_v19 = vadd.f32 %v2035_v13, %v2030_v22 }
 0x51c   : > { %v2037_v46 = vrot.slane %v2036_v19, 4 }
 0x51e   : > { %v2038_v27 = vadd.f32 %v2037_v46, %v2036_v19 }
 0x520   : > { %v2039_v16 = vrot.slane %v2038_v27, 2 }
 0x522   : > { %v2040_v45 = vadd.f32 %v2039_v16, %v2038_v27 }
 0x524   : > { %v2041_v59 = vrot.slane %v2040_v45, 1 }
 0x526   : > { %v2042_v54 = vadd.f32 %v2041_v59, %v2040_v45 }
 0x528   : > { %v2046_v8 = vrot.slane %v2042_v54, %v2889_v3 }
 0x52a   : > { %2663 = vrcp.f32 %v2046_v8 }
 0x537   : > { %v2664_v7 = vpop.eup %2663 }
 0x538   : > { %v2048_v58 = vmul.f32 %v2664_v7, %v2656_v4  ;;  %v2050_v32 = vmul.f32 %v2664_v7, %v2646_v10  ;;  %v2049_v39 = vmul.f32 %v2664_v7, %v2644_v26  ;;  %v2051_v17 = vmul.f32 %v2664_v7, %v2648_v9 }
 0x539   : > { %v2052_v26 = vmul.f32 %v2664_v7, %v2650_v12  ;;  %v2053_v4 = vmul.f32 %v2664_v7, %v2652_v40  ;;  %v2054_v21 = vmul.f32 %v2664_v7, %v2658_v6  ;;  %v2055_v11 = vmul.f32 %v2664_v7, %v2660_v41 }
 0x53a   : > { %v2061_v63 = vrot.slane %v2048_v58, %v2889_v3  ;;  %v2069_v38 = vrot.slane %v2050_v32, %v2889_v3  ;;  %v2065_v28 = vrot.slane %v2049_v39, %v2889_v3  ;;  %v2073_v10 = vrot.slane %v2051_v17, %v2889_v3 }
 0x53b   : > { %v2056_v25 = vmul.f32 %v2664_v7, %v2662_v57  ;;  %v2057_v43 = vmul.f32 %v2664_v7, %v3469_v52  ;;  %v3664_v52 = vld [vmem:[#allocation16_spill] sm:$0xff] }
 0x53c   : > { %v2099_v61 = vmul.f32 %v2061_v63, %v2992_v24  ;;  %v2098_v35 = vmul.f32 %v2061_v63, %v2976_v36  ;;  %v2103_v5 = vmul.f32 %v2069_v38, %v3001_v42  ;;  %v2100_v31 = vmul.f32 %v2065_v28, %v2970_v20 }
 0x53d   : > { %v2105_v9 = vmul.f32 %v2073_v10, %v3027_v44  ;;  %v2101_v24 = vmul.f32 %v2065_v28, %v2984_v55  ;;  %v2077_v36 = vrot.slane %v2052_v26, %v2889_v3  ;;  %v2102_v42 = vmul.f32 %v2069_v38, %v3017_v49 }
 0x53e   : > { %2120 = vadd.xlane.f32.xlu1 %v2099_v61  ;;  %2118 = vadd.xlane.f32.xlu0 %v2098_v35  ;;  %v2081_v20 = vrot.slane %v2053_v4, %v2889_v3  ;;  %v2104_v44 = vmul.f32 %v2073_v10, %v3038_v37  ;;  %v2085_v55 = vrot.slane %v2054_v21, %v2889_v3 }
 0x53f   : > { %v2107_v47 = vmul.f32 %v2077_v36, %v3047_v2  ;;  %v2106_v2 = vmul.f32 %v2077_v36, %v3058_v53  ;;  %v2089_v49 = vrot.slane %v2055_v11, %v2889_v3  ;;  %v2093_v37 = vrot.slane %v2056_v25, %v2889_v3 }
 0x540   : > { %v2109_v12 = vmul.f32 %v2081_v20, %v3072_v50  ;;  %v2111_v40 = vmul.f32 %v2085_v55, %v3654_v56  ;;  %v2108_v50 = vmul.f32 %v2081_v20, %v3082_v33  ;;  %v2110_v56 = vmul.f32 %v2085_v55, %v3102_v51  ;;  %v3663_v33 = vld [vmem:[#allocation15_spill] sm:$0xff] }
 0x541   : > { %v2113_v6 = vmul.f32 %v2089_v49, %v3655_v29  ;;  %v2115_v41 = vmul.f32 %v2093_v37, %v3137_v0  ;;  %v2097_v53 = vrot.slane %v2057_v43, %v2889_v3  ;;  %v2112_v29 = vmul.f32 %v2089_v49, %v3127_v48 }
 0x542   : > { %2128 = vadd.xlane.f32.xlu1 %v2103_v5  ;;  %2122 = vadd.xlane.f32.xlu0 %v2100_v31  ;;  %v2114_v14 = vmul.f32 %v2093_v37, %v3663_v33 }
 0x543   : > { %v2117_v57 = vmul.f32 %v2097_v53, %v3149_v1  ;;  %v2116_v15 = vmul.f32 %v2097_v53, %v3664_v52 }
 0x546   : > { %2132 = vadd.xlane.f32.xlu1 %v2105_v9  ;;  %2124 = vadd.xlane.f32.xlu0 %v2101_v24 }
 0x54a   : > { %2136 = vadd.xlane.f32.xlu1 %v2107_v47  ;;  %2126 = vadd.xlane.f32.xlu0 %v2102_v42 }
 0x54e   : > { %2140 = vadd.xlane.f32.xlu1 %v2109_v12  ;;  %2130 = vadd.xlane.f32.xlu0 %v2104_v44 }
 0x552   : > { %2144 = vadd.xlane.f32.xlu1 %v2111_v40  ;;  %2134 = vadd.xlane.f32.xlu0 %v2106_v2 }
 0x556   : > { %2148 = vadd.xlane.f32.xlu1 %v2113_v6  ;;  %2138 = vadd.xlane.f32.xlu0 %v2108_v50 }
 0x55a   : > { %2152 = vadd.xlane.f32.xlu1 %v2115_v41  ;;  %2142 = vadd.xlane.f32.xlu0 %v2110_v56 }
 0x55e   : > { %2156 = vadd.xlane.f32.xlu1 %v2117_v57  ;;  %2146 = vadd.xlane.f32.xlu0 %v2112_v29 }
 0x562   : > { %2150 = vadd.xlane.f32.xlu0 %v2114_v14 }
 0x566   : > { %2154 = vadd.xlane.f32.xlu0 %v2116_v15 }
 0x5c7   : > { %v2121_v18 = vpop.xlane.xlu1 %2120  ;;  %v2119_v0 = vpop.xlane.xlu0 %2118 }
 0x5c8   : > { %v2357_v51 = vrot.slane %v2121_v18, %v3665_v34  ;;  %v2353_v3 = vrot.slane %v2119_v0, %v3666_v23  ;;  %v2159_v32 = vmul.f32 %v2121_v18, %v2121_v18  ;;  %v2158_v17 = vmul.f32 %v2119_v0, %v2119_v0 }
 0x5ca   : > { %v2358_v30 = vsel %vm807_vm0, %v2357_v51, %v2353_v3  ;;  %v2205_v26 = vrot.slane %v2159_v32, %v3665_v34  ;;  %v2201_v4 = vrot.slane %v2158_v17, %v3666_v23 }
 0x5cb   : > { %v2129_v60 = vpop.xlane.xlu1 %2128  ;;  %v2123_v1 = vpop.xlane.xlu0 %2122 }
 0x5cc   : > { %v2362_v13 = vrot.slane %v2123_v1, %v3666_v23  ;;  %v2375_v45 = vrot.slane %v2129_v60, %v3665_v34  ;;  %v2160_v61 = vmul.f32 %v2123_v1, %v2123_v1  ;;  %v2163_v47 = vmul.f32 %v2129_v60, %v2129_v60 }
 0x5cd   : > { %v2206_v41 = vsel %vm807_vm0, %v2205_v26, %v2201_v4 }
 0x5ce   : > { %v2210_v21 = vrot.slane %v2160_v61, %v3666_v23  ;;  %v2223_v56 = vrot.slane %v2163_v47, %v3665_v34 }
 0x5cf   : > { %v2133_v62 = vpop.xlane.xlu1 %2132  ;;  %v2125_v48 = vpop.xlane.xlu0 %2124 }
 0x5d0   : > { %v2366_v22 = vrot.slane %v2125_v48, %v3665_v34  ;;  %v2384_v39 = vrot.slane %v2133_v62, %v3665_v34  ;;  %v2161_v35 = vmul.f32 %v2125_v48, %v2125_v48  ;;  %v2165_v42 = vmul.f32 %v2133_v62, %v2133_v62 }
 0x5d2   : > { %v2367_v19 = vsel %vm807_vm0, %v2366_v22, %v2362_v13  ;;  %v2214_v12 = vrot.slane %v2161_v35, %v3665_v34  ;;  %v2232_v53 = vrot.slane %v2165_v42, %v3665_v34 }
 0x5d3   : > { %v2440_v46 = vsel %vm890_vm1, %v2367_v19, %v2358_v30  ;;  %v2137_v27 = vpop.xlane.xlu1 %2136  ;;  %v2127_v16 = vpop.xlane.xlu0 %2126 }
 0x5d4   : > { %v2371_v59 = vrot.slane %v2127_v16, %v3666_v23  ;;  %v2162_v31 = vmul.f32 %v2127_v16, %v2127_v16  ;;  %v2393_v9 = vrot.slane %v2137_v27, %v3665_v34  ;;  %v2167_v40 = vmul.f32 %v2137_v27, %v2137_v27 }
 0x5d5   : > { %v2215_v29 = vsel %vm807_vm0, %v2214_v12, %v2210_v21 }
 0x5d6   : > { %v2376_v54 = vsel %vm807_vm0, %v2375_v45, %v2371_v59  ;;  %v2219_v2 = vrot.slane %v2162_v31, %v3666_v23  ;;  %v2241_v18 = vrot.slane %v2167_v40, %v3665_v34  ;;  %v2288_v13 = vsel %vm890_vm1, %v2215_v29, %v2206_v41 }
 0x5d7   : > { %v2141_v8 = vpop.xlane.xlu1 %2140  ;;  %v2131_v7 = vpop.xlane.xlu0 %2130  ;;  %v2441_v58 = vsel %vm892_vm2, %v2376_v54, %v2440_v46 }
 0x5d8   : > { %v2380_v63 = vrot.slane %v2131_v7, %v3666_v23  ;;  %v2164_v24 = vmul.f32 %v2131_v7, %v2131_v7  ;;  %v2169_v49 = vmul.f32 %v2141_v8, %v2141_v8  ;;  %v2402_v6 = vrot.slane %v2141_v8, %v3665_v34 }
 0x5d9   : > { %v2224_v0 = vsel %vm807_vm0, %v2223_v56, %v2219_v2 }
 0x5da   : > { %v2385_v38 = vsel %vm807_vm0, %v2384_v39, %v2380_v63  ;;  %v2228_v50 = vrot.slane %v2164_v24, %v3666_v23  ;;  %v2250_v30 = vrot.slane %v2169_v49, %v3665_v34  ;;  %v2289_v27 = vsel %vm892_vm2, %v2224_v0, %v2288_v13 }
 0x5db   : > { %v2145_v28 = vpop.xlane.xlu1 %2144  ;;  %v2135_v5 = vpop.xlane.xlu0 %2134  ;;  %v2442_v10 = vsel %vm894_vm3, %v2385_v38, %v2441_v58 }
 0x5dc   : > { %v2389_v36 = vrot.slane %v2135_v5, %v3666_v23  ;;  %v2166_v20 = vmul.f32 %v2135_v5, %v2135_v5  ;;  %v2171_v33 = vmul.f32 %v2145_v28, %v2145_v28  ;;  %v2233_v60 = vsel %vm807_vm0, %v2232_v53, %v2228_v50 }
 0x5dd   : > { %v2411_v1 = vrot.slane %v2145_v28, %v3665_v34  ;;  %v2290_v8 = vsel %vm894_vm3, %v2233_v60, %v2289_v27 }
 0x5de   : > { %v2394_v44 = vsel %vm807_vm0, %v2393_v9, %v2389_v36  ;;  %v2237_v57 = vrot.slane %v2166_v20, %v3666_v23  ;;  %v2259_v16 = vrot.slane %v2171_v33, %v3665_v34 }
 0x5df   : > { %v2149_v55 = vpop.xlane.xlu1 %2148  ;;  %v2139_v11 = vpop.xlane.xlu0 %2138  ;;  %v2443_v25 = vsel %vm896_vm4, %v2394_v44, %v2442_v10 }
 0x5e0   : > { %v2168_v37 = vmul.f32 %v2139_v11, %v2139_v11  ;;  %v2398_v43 = vrot.slane %v2139_v11, %v3666_v23  ;;  %v2242_v22 = vsel %vm807_vm0, %v2241_v18, %v2237_v57  ;;  %v2173_v19 = vmul.f32 %v2149_v55, %v2149_v55 }
 0x5e1   : > { %v2420_v32 = vrot.slane %v2149_v55, %v3665_v34  ;;  %v2291_v17 = vsel %vm896_vm4, %v2242_v22, %v2290_v8 }
 0x5e2   : > { %v2246_v14 = vrot.slane %v2168_v37, %v3666_v23  ;;  %v2403_v52 = vsel %vm807_vm0, %v2402_v6, %v2398_v43  ;;  %v2268_v61 = vrot.slane %v2173_v19, %v3665_v34 }
 0x5e3   : > { %v2143_v15 = vpop.xlane.xlu0 %2142  ;;  %v2444_v51 = vsel %vm898_vm5, %v2403_v52, %v2443_v25  ;;  %v2153_v62 = vpop.xlane.xlu1 %2152 }
 0x5e4   : > { %v2170_v3 = vmul.f32 %v2143_v15, %v2143_v15  ;;  %v2407_v48 = vrot.slane %v2143_v15, %v3666_v23  ;;  %v2251_v45 = vsel %vm807_vm0, %v2250_v30, %v2246_v14  ;;  %v2429_v28 = vrot.slane %v2153_v62, %v3665_v34 }
 0x5e5   : > { %v2292_v38 = vsel %vm898_vm5, %v2251_v45, %v2291_v17  ;;  %v2175_v42 = vmul.f32 %v2153_v62, %v2153_v62 }
 0x5e6   : > { %v2255_v46 = vrot.slane %v2170_v3, %v3666_v23  ;;  %v2412_v59 = vsel %vm807_vm0, %v2411_v1, %v2407_v48 }
 0x5e7   : > { %v2147_v54 = vpop.xlane.xlu0 %2146  ;;  %v2445_v7 = vsel %vm900_vm6, %v2412_v59, %v2444_v51  ;;  %v3571_v5 = vpop.xlane.xlu1 %2156  ;;  %v2277_v40 = vrot.slane %v2175_v42, %v3665_v34 }
 0x5e8   : > { %v2172_v58 = vmul.f32 %v2147_v54, %v2147_v54  ;;  %v2416_v39 = vrot.slane %v2147_v54, %v3666_v23  ;;  %v2260_v63 = vsel %vm807_vm0, %v2259_v16, %v2255_v46  ;;  %v2177_v20 = vmul.f32 %v3571_v5, %v3571_v5 }
 0x5e9   : > { %v2293_v26 = vsel %vm900_vm6, %v2260_v63, %v2292_v38  ;;  %v2438_v27 = vrot.slane %v3571_v5, %v3665_v34 }
 0x5ea   : > { %v2264_v35 = vrot.slane %v2172_v58, %v3666_v23  ;;  %v2421_v31 = vsel %vm807_vm0, %v2420_v32, %v2416_v39  ;;  %v2286_v2 = vrot.slane %v2177_v20, %v3665_v34 }
 0x5eb   : > { %v2151_v10 = vpop.xlane.xlu0 %2150  ;;  %v2446_v9 = vsel %vm902_vm7, %v2421_v31, %v2445_v7 }
 0x5ec   : > { %v2174_v24 = vmul.f32 %v2151_v10, %v2151_v10  ;;  %v2425_v36 = vrot.slane %v2151_v10, %v3666_v23  ;;  %v2269_v4 = vsel %vm807_vm0, %v2268_v61, %v2264_v35 }
 0x5ed   : > { %v2294_v47 = vsel %vm902_vm7, %v2269_v4, %v2293_v26 }
 0x5ee   : > { %v2430_v21 = vsel %vm807_vm0, %v2429_v28, %v2425_v36  ;;  %v2298_v12 = vsel %vm907_vm8, %v2294_v47, 0.0  ;;  %v2273_v55 = vrot.slane %v2174_v24, %v3666_v23 }
 0x5ef   : > { %2299 = vadd.xlane.f32.xlu0 %v2298_v12  ;;  %v2155_v44 = vpop.xlane.xlu0 %2154 }
 0x5f0   : > { %v2176_v11 = vmul.f32 %v2155_v44, %v2155_v44  ;;  %v2278_v25 = vsel %vm807_vm0, %v2277_v40, %v2273_v55  ;;  %v2434_v22 = vrot.slane %v2155_v44, %v3666_v23 }
 0x5f2   : > { %v2282_v49 = vrot.slane %v2176_v11, %v3666_v23  ;;  %v2439_v16 = vsel %vm807_vm0, %v2438_v27, %v2434_v22 }
 0x5f3   : > { %v2447_v8 = vsel %vm890_vm1, %v2439_v16, %v2430_v21 }
 0x5f4   : > { %v2287_v6 = vsel %vm807_vm0, %v2286_v2, %v2282_v49 }
 0x5f5   : > { %v2295_v50 = vsel %vm890_vm1, %v2287_v6, %v2278_v25 }
 0x5f6   : > { %v2301_v37 = vsel %vm911_vm9, %v2295_v50, 0.0 }
 0x5f7   : > { %2302 = vadd.xlane.f32.xlu1 %v2301_v37 }
 0x678   : > { %v2300_v43 = vpop.xlane.xlu0 %2299 }
 0x679   : > { %2665 = vrsqrt.f32 %v2300_v43  ;;  %v2318_v56 = vadd.f32 1.0, %v2300_v43  ;;  %vm2306_vm2 = vcmp.eq.f32.partialorder %v2300_v43, inf  ;;  %v2309_v29 = vand.u32 2147483648, %v2300_v43 }
 0x67a   : > { %vm2308_vm3 = vcmp.eq.f32.partialorder %v2300_v43, 0.0 }
 0x680   : > { %v2303_v41 = vpop.xlane.xlu1 %2302 }
 0x681   : > { %2667 = vrsqrt.f32 %v2303_v41  ;;  %v2319_v15 = vadd.f32 1.0, %v2303_v41  ;;  %vm2313_vm4 = vcmp.eq.f32.partialorder %v2303_v41, inf  ;;  %v2316_v51 = vand.u32 2147483648, %v2303_v41 }
 0x682   : > { %2669 = vrcp.f32 %v2318_v56  ;;  %vm2315_vm5 = vcmp.eq.f32.partialorder %v2303_v41, 0.0 }
 0x686   : > { %v2666_v53 = vpop.eup %2665 }
 0x687   : > { %v2305_v57 = vmul.f32 %v2666_v53, %v2300_v43 }
 0x689   : > { %v2307_v33 = vsel %vm2306_vm2, %v2300_v43, %v2305_v57 }
 0x68a   : > { %v2310_v14 = vsel %vm2308_vm3, %v2309_v29, %v2307_v33 }
 0x68b   : > { %v2324_v52 = vadd.f32 1e-08, %v2310_v14 }
 0x68d   : > { %2671 = vrcp.f32 %v2324_v52 }
 0x68e   : > { %v2668_v18 = vpop.eup %2667  ;;  %2673 = vrcp.f32 %v2319_v15 }
 0x68f   : > { %v2312_v0 = vmul.f32 %v2668_v18, %v2303_v41  ;;  %v2670_v1 = vpop.eup %2669 }
 0x690   : > { %v2321_v62 = vmul.f32 %v2670_v1, %v2300_v43 }
 0x691   : > { %v2314_v3 = vsel %vm2313_vm4, %v2303_v41, %v2312_v0 }
 0x692   : > { %v2317_v30 = vsel %vm2315_vm5, %v2316_v51, %v2314_v3 }
 0x693   : > { %v2325_v60 = vadd.f32 1e-08, %v2317_v30 }
 0x695   : > { %2675 = vrcp.f32 %v2325_v60 }
 0x69a   : > { %v2672_v48 = vpop.eup %2671 }
 0x69b   : > { %v2327_v13 = vmul.f32 %v2672_v48, %v2321_v62  ;;  %v2674_v46 = vpop.eup %2673 }
 0x69c   : > { %v2323_v45 = vmul.f32 %v2674_v46, %v2303_v41 }
 0x69d   : > { %v2450_v19 = vmul.f32 %v2446_v9, %v2327_v13 }
 0x69f   : > { %2452 = vst.msk [vmem:[%s175_s4] sm:$0xff] %vm907_vm8, %v2450_v19 }
 0x6a2   : > { %v2676_v59 = vpop.eup %2675 }
 0x6a3   : > { %v2329_v54 = vmul.f32 %v2676_v59, %v2323_v45 }
 0x6a5   : > { %v2451_v7 = vmul.f32 %v2447_v8, %v2329_v54 }
 0x6a7   : > { %2453 = vst.msk [vmem:[%s175_s4 + $0x8] sm:$0x3] %vm911_vm9, %v2451_v7 }
 0x6a8 PF: > { %p13_p7 = scmp.ge.s32.totalorder %s2834_s19, 4   ;;  %s3667_s9 = smov %s2761_s10 }
 0x6a9   : > { %s3668_s10 = smov %s2765_s11  ;;  %s3669_s11 = smov %s2851_s27 }
 0x6aa   : > { %s3670_s12 = smov %s2834_s19  ;;  %15 = sbr.rel (!%p13_p7) target bundleno = 4 (0x4), region = 79 }
 0x6af   :  { %2475 = vsyncpa [#allocation3], 1 }
 0x6b0   :  { %2477 = vsyncpa [#allocation3 + $0x1], 1 }
 0x6b1   :  { %2478 = vsyncpa [#allocation5], 1 }

</bundles_post_ra>
